<compile_context>
chip_gen: v7x
topology: tpu7x:2x2x1
jax: 0.10.0
libtpu: 0.0.40
codegen_flags: <defaults>
</compile_context>

<pallas_src>
import functools
import math

import jax
import jax.numpy as jnp
from jax.experimental import pallas as pl
from jax.experimental.pallas import tpu as pltpu

_SQRT_2_OVER_PI = math.sqrt(2.0 / math.pi)
_LANE = 128
_ROW_ALIGN = 16                      # bf16 packs two rows per sublane
_NODE_ROW_CAP = 512
_EDGE_ROW_CAP = 1024                 # edge kernels are mem-bound -> bigger tiles
_VMEM_LIMIT_BYTES = 32 * 1024 * 1024


def _gelu(x):
    # tanh-approximation GELU (QAGNN's custom GELU module)
    return 0.5 * x * (1.0 + jnp.tanh(_SQRT_2_OVER_PI * (x + 0.044715 * x * x * x)))


def _round_up(x, m):
    return (x + m - 1) // m * m


def _row_plan(m, cap):
    """Return (padded_rows, row_tile).  Deterministic and idempotent
    (_row_plan(mp, cap)[0] == mp), so padded arrays flow between kernels of the
    same row-domain without re-padding."""
    mp = _round_up(m, _ROW_ALIGN)
    if mp <= cap:
        if mp >= 2 * _ROW_ALIGN and mp % (2 * _ROW_ALIGN) == 0:
            return mp, mp // 2       # >=2 grid blocks -> megacore / v7x 2-TC
        return mp, mp
    best_mp, best_tm = None, None
    for tm in (cap, cap // 2, cap // 4):   # minimize padding waste for large m
        cand = _round_up(m, tm)
        if best_mp is None or cand < best_mp:
            best_mp, best_tm = cand, tm
    return best_mp, best_tm


def _pad_rows(x, rows):
    if x.shape[0] == rows:
        return x
    return jnp.pad(x, ((0, rows - x.shape[0]),) + ((0, 0),) * (x.ndim - 1))


def _pad_cols(x, cols):
    if x.shape[1] == cols:
        return x
    return jnp.pad(x, ((0, 0), (0, cols - x.shape[1])))


def _cparams():
    return pltpu.CompilerParams(
        dimension_semantics=("parallel",),
        vmem_limit_bytes=_VMEM_LIMIT_BYTES,
    )


# ---------------------------------------------------------------------------
# Pallas kernels
# ---------------------------------------------------------------------------
def _linear_kernel(*refs, n_x, has_bias, has_affine, act):
    out_ref = refs[-1]
    y = jnp.dot(refs[0][...], refs[n_x][...], preferred_element_type=jnp.float32)
    for i in range(1, n_x):
        y = y + jnp.dot(refs[i][...], refs[n_x + i][...],
                        preferred_element_type=jnp.float32)
    idx = 2 * n_x
    if has_bias:
        y = y + refs[idx][...]
        idx += 1
    if has_affine:
        y = y * refs[idx][...] + refs[idx + 1][...]
    if act == "relu":
        y = jnp.maximum(y, 0.0)
    elif act == "gelu":
        y = _gelu(y)
    out_ref[...] = y.astype(out_ref.dtype)


def linear_op(xs, ws, b=None, scale=None, shift=None, act="none",
              out_dtype=jnp.float32, row_cap=_NODE_ROW_CAP, keep_padded=False):
    """y = act(affine(sum_i xs[i] @ ws[i] + b)); row-tiled, bf16 MXU operands,
    f32 accumulation.  Bias/affine epilogue (and their operand DMAs) are
    emitted only when supplied."""
    m = xs[0].shape[0]
    n = ws[0].shape[1]
    mp, tm = _row_plan(m, row_cap)
    args, in_specs = [], []
    for x in xs:
        k = x.shape[1]
        assert k % _LANE == 0 and x.shape[0] == m
        args.append(_pad_rows(x.astype(jnp.bfloat16), mp))
        in_specs.append(pl.BlockSpec((tm, k), lambda i: (i, 0)))
    for x, w in zip(xs, ws):
        assert w.shape == (x.shape[1], n) and n % _LANE == 0
        args.append(w.astype(jnp.bfloat16))
        in_specs.append(pl.BlockSpec(w.shape, lambda i: (0, 0)))
    has_bias = b is not None
    if has_bias:
        args.append(b.reshape(1, n).astype(jnp.float32))
        in_specs.append(pl.BlockSpec((1, n), lambda i: (0, 0)))
    has_affine = scale is not None
    if has_affine:
        args.append(scale.reshape(1, n).astype(jnp.float32))
        in_specs.append(pl.BlockSpec((1, n), lambda i: (0, 0)))
        args.append(shift.reshape(1, n).astype(jnp.float32))
        in_specs.append(pl.BlockSpec((1, n), lambda i: (0, 0)))
    out = pl.pallas_call(
        functools.partial(_linear_kernel, n_x=len(xs), has_bias=has_bias,
                          has_affine=has_affine, act=act),
        out_shape=jax.ShapeDtypeStruct((mp, n), out_dtype),
        grid=(mp // tm,),
        in_specs=in_specs,
        out_specs=pl.BlockSpec((tm, n), lambda i: (i, 0)),
        compiler_params=_cparams(),
    )(*args)
    return out if keep_padded else out[:m]


def _mlp_gelu_kernel(x_ref, w1_ref, b1_ref, s_ref, t_ref, w2_ref, b2_ref, o_ref):
    h = jnp.dot(x_ref[...], w1_ref[...], preferred_element_type=jnp.float32)
    h = jnp.maximum((h + b1_ref[...]) * s_ref[...] + t_ref[...], 0.0)
    y = jnp.dot(h.astype(jnp.bfloat16), w2_ref[...],
                preferred_element_type=jnp.float32) + b2_ref[...]
    o_ref[...] = _gelu(y).astype(o_ref.dtype)


def mlp_gelu(x, w1, b1, scale, shift, w2, b2, out_dtype=jnp.bfloat16,
             row_cap=_NODE_ROW_CAP, keep_padded=False):
    m, k = x.shape
    hdim = w1.shape[1]
    n = w2.shape[1]
    assert k % _LANE == 0 and hdim % _LANE == 0 and n % _LANE == 0
    mp, tm = _row_plan(m, row_cap)
    out = pl.pallas_call(
        _mlp_gelu_kernel,
        out_shape=jax.ShapeDtypeStruct((mp, n), out_dtype),
        grid=(mp // tm,),
        in_specs=[
            pl.BlockSpec((tm, k), lambda i: (i, 0)),
            pl.BlockSpec((k, hdim), lambda i: (0, 0)),
            pl.BlockSpec((1, hdim), lambda i: (0, 0)),
            pl.BlockSpec((1, hdim), lambda i: (0, 0)),
            pl.BlockSpec((1, hdim), lambda i: (0, 0)),
            pl.BlockSpec((hdim, n), lambda i: (0, 0)),
            pl.BlockSpec((1, n), lambda i: (0, 0)),
        ],
        out_specs=pl.BlockSpec((tm, n), lambda i: (i, 0)),
        compiler_params=_cparams(),
    )(_pad_rows(x.astype(jnp.bfloat16), mp), w1.astype(jnp.bfloat16),
      b1.reshape(1, hdim).astype(jnp.float32),
      scale.reshape(1, hdim).astype(jnp.float32),
      shift.reshape(1, hdim).astype(jnp.float32),
      w2.astype(jnp.bfloat16), b2.reshape(1, n).astype(jnp.float32))
    return out if keep_padded else out[:m]


def _attn_score_kernel(q_ref, k_ref, ekm_ref, c_ref, o_ref):
    # per-head score = sum_d q*k / sqrt(dph) via a block-diagonal MXU matmul
    q = q_ref[...].astype(jnp.float32)
    k = k_ref[...].astype(jnp.float32) + ekm_ref[...].astype(jnp.float32)
    qk = (q * k).astype(jnp.bfloat16)
    o_ref[...] = jnp.dot(qk, c_ref[...], preferred_element_type=jnp.float32)


def attention_scores(q_e, k_dst, edge_km, score_proj, hp, row_cap=_EDGE_ROW_CAP):
    ep = q_e.shape[0]
    mp, tm = _row_plan(ep, row_cap)
    assert mp == ep and k_dst.shape[0] == ep and edge_km.shape[0] == ep
    return pl.pallas_call(
        _attn_score_kernel,
        out_shape=jax.ShapeDtypeStruct((ep, _LANE), jnp.float32),
        grid=(ep // tm,),
        in_specs=[
            pl.BlockSpec((tm, hp), lambda i: (i, 0)),     # gathered query (src)
            pl.BlockSpec((tm, hp), lambda i: (i, 0)),     # gathered node key (dst)
            pl.BlockSpec((tm, hp), lambda i: (i, 0)),     # edge_km key half (col blk 0)
            pl.BlockSpec((hp, _LANE), lambda i: (0, 0)),  # block-diag score projection
        ],
        out_specs=pl.BlockSpec((tm, _LANE), lambda i: (i, 0)),   # lane-dense output
        compiler_params=_cparams(),
    )(q_e, k_dst, edge_km, score_proj)


def _weighted_msg_kernel(mn_ref, ekm_ref, a_ref, e_ref, o_ref):
    m = mn_ref[...].astype(jnp.float32) + ekm_ref[...].astype(jnp.float32)
    alpha_full = jnp.dot(a_ref[...], e_ref[...], preferred_element_type=jnp.float32)
    o_ref[...] = (m * alpha_full).astype(o_ref.dtype)


def weighted_messages(m_src, edge_km, alpha_pad, head_expand, hp,
                      row_cap=_EDGE_ROW_CAP):
    ep = m_src.shape[0]
    mp, tm = _row_plan(ep, row_cap)
    assert mp == ep and edge_km.shape[0] == ep and alpha_pad.shape == (ep, _LANE)
    return pl.pallas_call(
        _weighted_msg_kernel,
        out_shape=jax.ShapeDtypeStruct((ep, hp), jnp.float32),
        grid=(ep // tm,),
        in_specs=[
            pl.BlockSpec((tm, hp), lambda i: (i, 0)),      # gathered node msg (src)
            pl.BlockSpec((tm, hp), lambda i: (i, 1)),      # edge_km msg half (col blk 1)
            pl.BlockSpec((tm, _LANE), lambda i: (i, 0)),   # 128-lane padded alpha
            pl.BlockSpec((_LANE, hp), lambda i: (0, 0)),   # head -> lanes expansion
        ],
        out_specs=pl.BlockSpec((tm, hp), lambda i: (i, 0)),
        compiler_params=_cparams(),
    )(m_src, edge_km, alpha_pad, head_expand)


# ---------------------------------------------------------------------------
# Parameters (deterministic, synthetic) + padded/bf16 preparation
# ---------------------------------------------------------------------------
def _linear_init(key, fan_in, fan_out):
    kw, kb = jax.random.split(key)
    bound = 1.0 / math.sqrt(fan_in)
    w = jax.random.uniform(kw, (fan_in, fan_out), jnp.float32, -bound, bound)
    b = jax.random.uniform(kb, (fan_out,), jnp.float32, -bound, bound)
    return w, b


def _bn_fold(gamma, beta, mean, var, eps=1e-5):
    scale = gamma / jnp.sqrt(var + eps)
    shift = beta - mean * scale
    return scale, shift


def init_params(key, hidden, n_ntype, n_etype, k_layers):
    keys = jax.random.split(key, 8 + 6 * k_layers)
    it = iter(keys)
    bn_identity = _bn_fold(jnp.ones(hidden), jnp.zeros(hidden),
                           jnp.zeros(hidden), jnp.ones(hidden))
    params = {
        "emb_node_type": _linear_init(next(it), n_ntype, hidden // 2),
        "emb_score": _linear_init(next(it), hidden // 2, hidden // 2),
        "edge_enc_1": _linear_init(next(it), n_etype + 1 + n_ntype * 2, hidden),
        "edge_enc_bn": bn_identity,
        "edge_enc_2": _linear_init(next(it), hidden, hidden),
        "Vh": _linear_init(next(it), hidden, hidden),
        "Vx": _linear_init(next(it), hidden, hidden),
        "gnn": [],
    }
    for _ in range(k_layers):
        params["gnn"].append({
            "key": _linear_init(next(it), 3 * hidden, hidden),
            "msg": _linear_init(next(it), 3 * hidden, hidden),
            "query": _linear_init(next(it), 2 * hidden, hidden),
            "mlp1": _linear_init(next(it), hidden, hidden),
            "mlp_bn": bn_identity,
            "mlp2": _linear_init(next(it), hidden, hidden),
        })
    return params


def _embed2(blocks, rows, cols):
    out = jnp.zeros((rows, cols), jnp.float32)
    for (r0, c0, w) in blocks:
        out = out.at[r0:r0 + w.shape[0], c0:c0 + w.shape[1]].set(w)
    return out.astype(jnp.bfloat16)


def _embed1(blocks, n):
    out = jnp.zeros((n,), jnp.float32)
    for (off, b) in blocks:
        out = out.at[off:off + b.shape[0]].set(b)
    return out


def prepare_params(p, hidden, n_ntype, n_etype, head_count):
    """Zero-pad logical params to 128-lane multiples (padded lanes stay exactly
    zero through every layer), split key/msg/query into node-/edge-side
    contributions, and build the constant per-head MXU projection matrices."""
    h = hidden
    h2 = hidden // 2
    assert h % 2 == 0 and h % head_count == 0 and head_count <= _LANE
    dph = h // head_count
    hp = _round_up(h, _LANE)
    ntype_p = _round_up(n_ntype, _LANE)
    score_in_p = _round_up(h2, _LANE)
    edge_in_p = _round_up(n_etype + 1 + 2 * n_ntype, _LANE)

    w_t, b_t = p["emb_node_type"]
    w_s, b_s = p["emb_score"]
    w_e1, b_e1 = p["edge_enc_1"]
    s_e, t_e = p["edge_enc_bn"]
    w_e2, b_e2 = p["edge_enc_2"]
    w_vh, b_vh = p["Vh"]
    w_vx, b_vx = p["Vx"]

    # scores = (q*k) @ score_proj ; score_proj[r, head(r)] = 1/sqrt(dph)
    r = jnp.arange(hp)
    c = jnp.arange(_LANE)
    score_proj = (((r[:, None] // dph) == c[None, :]) & (r[:, None] < h))
    score_proj = (score_proj.astype(jnp.float32) / math.sqrt(dph)).astype(jnp.bfloat16)
    # alpha_full = alpha_pad @ head_expand ; head_expand[head(c), c] = 1
    c2 = jnp.arange(hp)
    r2 = jnp.arange(_LANE)
    head_expand = (((c2[None, :] // dph) == r2[:, None]) & (c2[None, :] < h))
    head_expand = head_expand.astype(jnp.bfloat16)

    pp = {
        # node_feature_extra = GELU(T@Wt+bt) || GELU(Bsin@Ws+bs) in one dual-linear
        "extra_w1": _embed2([(0, 0, w_t)], ntype_p, hp),
        "extra_w2": _embed2([(0, h2, w_s)], score_in_p, hp),
        "extra_b": _embed1([(0, b_t), (h2, b_s)], hp),
        # shared edge encoder (Linear -> BN -> ReLU -> Linear)
        "edge1_w": _embed2([(0, 0, w_e1)], edge_in_p, hp),
        "edge1_b": _embed1([(0, b_e1)], hp),
        "edge1_s": jnp.ones((hp,), jnp.float32).at[:h].set(s_e),
        "edge1_t": _embed1([(0, t_e)], hp),
        "edge2_w": _embed2([(0, 0, w_e2)], hp, hp),
        "edge2_b": _embed1([(0, b_e2)], hp),
        # output head: GELU(Vh(H) + Vx(X))
        "vh_w": _embed2([(0, 0, w_vh)], hp, hp),
        "vx_w": _embed2([(0, 0, w_vx)], hp, hp),
        "v_b": _embed1([(0, b_vh + b_vx)], hp),
        "score_proj": score_proj,
        "head_expand": head_expand,
        "gnn": [],
    }
    for lay in p["gnn"]:
        wk, bk = lay["key"]
        wm, bm = lay["msg"]
        wq, bq = lay["query"]
        w1, b1 = lay["mlp1"]
        s1, t1 = lay["mlp_bn"]
        w2, b2 = lay["mlp2"]
        pp["gnn"].append({
            # node-side contributions to [key | msg | query]
            "kmq_w_x": _embed2([(0, 0, wk[:h]), (0, hp, wm[:h]),
                                (0, 2 * hp, wq[:h])], hp, 3 * hp),
            "kmq_w_extra": _embed2([(0, 0, wk[h:2 * h]), (0, hp, wm[h:2 * h]),
                                    (0, 2 * hp, wq[h:2 * h])], hp, 3 * hp),
            "kmq_b": _embed1([(0, bk), (hp, bm), (2 * hp, bq)], 3 * hp),
            # edge-side contributions to [key | msg] (no bias; added on node side)
            "km_w_edge": _embed2([(0, 0, wk[2 * h:]), (0, hp, wm[2 * h:])],
                                 hp, 2 * hp),
            # fused mlp1 + BN + ReLU + mlp2 (+ GELU from mp_helper)
            "mlp_w1": _embed2([(0, 0, w1)], hp, hp),
            "mlp_b1": _embed1([(0, b1)], hp),
            "mlp_s": jnp.ones((hp,), jnp.float32).at[:h].set(s1),
            "mlp_t": _embed1([(0, t1)], hp),
            "mlp_w2": _embed2([(0, 0, w2)], hp, hp),
            "mlp_b2": _embed1([(0, b2)], hp),
        })
    return pp


# ---------------------------------------------------------------------------
# Forward pass
# ---------------------------------------------------------------------------
def qagnn_forward(pp, H, edge_index, edge_type, node_type, node_score,
                  n_ntype, n_etype, head_count, hidden):
    B, n_node, _ = H.shape
    N = B * n_node
    h = hidden
    h2 = h // 2
    hp = _round_up(h, _LANE)
    ntype_p = _round_up(n_ntype, _LANE)
    score_in_p = _round_up(h2, _LANE)
    edge_in_p = _round_up(n_etype + 1 + 2 * n_ntype, _LANE)

    np_, _ = _row_plan(N, _NODE_ROW_CAP)            # node-domain padded rows
    nt_flat = node_type.reshape(-1)

    # node_feature_extra = concat(GELU(Linear(one_hot)), GELU(Linear(sin-basis)))
    T = (nt_flat[:, None] == jnp.arange(ntype_p)[None, :]).astype(jnp.float32)
    js = jnp.power(1.1, jnp.arange(h2, dtype=jnp.float32))
    Bsin = jnp.sin(js[None, None, :] * node_score).reshape(N, h2)
    extra = linear_op([T, _pad_cols(Bsin, score_in_p)],
                      [pp["extra_w1"], pp["extra_w2"]], b=pp["extra_b"],
                      act="gelu", out_dtype=jnp.bfloat16,
                      row_cap=_NODE_ROW_CAP, keep_padded=True)       # (np_, hp)

    # edge embeddings via shared edge_encoder -- layer-invariant, computed once
    E0 = edge_index.shape[1]
    E_total = E0 + N
    ep, _ = _row_plan(E_total, _EDGE_ROW_CAP)       # edge-domain padded rows

    edge_vec = (edge_type[:, None] == jnp.arange(n_etype + 1)[None, :]).astype(jnp.float32)
    self_edge_vec = jnp.zeros((N, n_etype + 1), jnp.float32).at[:, n_etype].set(1.0)
    head_vec = (nt_flat[edge_index[0]][:, None] == jnp.arange(n_ntype)[None, :]).astype(jnp.float32)
    tail_vec = (nt_flat[edge_index[1]][:, None] == jnp.arange(n_ntype)[None, :]).astype(jnp.float32)
    self_head = (nt_flat[:, None] == jnp.arange(n_ntype)[None, :]).astype(jnp.float32)
    enc_in = jnp.concatenate([
        jnp.concatenate([edge_vec, self_edge_vec], axis=0),
        jnp.concatenate([jnp.concatenate([head_vec, tail_vec], axis=1),
                         jnp.concatenate([self_head, self_head], axis=1)], axis=0),
    ], axis=1)
    h1 = linear_op([_pad_cols(enc_in, edge_in_p)], [pp["edge1_w"]],
                   b=pp["edge1_b"], scale=pp["edge1_s"], shift=pp["edge1_t"],
                   act="relu", out_dtype=jnp.bfloat16,
                   row_cap=_EDGE_ROW_CAP, keep_padded=True)
    edge_emb = linear_op([h1], [pp["edge2_w"]], b=pp["edge2_b"],
                         out_dtype=jnp.bfloat16,
                         row_cap=_EDGE_ROW_CAP, keep_padded=True)    # (ep, hp)

    # full edge list with self loops; pre-padded index vectors (no re-pads later)
    loop = jnp.arange(N, dtype=edge_index.dtype)
    src = jnp.concatenate([edge_index[0], loop])
    dst = jnp.concatenate([edge_index[1], loop])
    pad_e = ep - E_total
    zpad = jnp.zeros((pad_e,), src.dtype)
    src_p = jnp.concatenate([src, zpad])
    dst_p = jnp.concatenate([dst, zpad])
    # layer-invariant source degrees (self loops included, as in the reference)
    deg_e = jax.ops.segment_sum(jnp.ones((E_total,), jnp.float32), src,
                                num_segments=N)[src]                 # (E_total,)

    X = _pad_rows(_pad_cols(H.reshape(N, h), hp).astype(jnp.bfloat16), np_)

    for lay in pp["gnn"]:
        # node-side [key|msg|query] contributions at node granularity (N << E)
        node_kmq = linear_op([X, extra], [lay["kmq_w_x"], lay["kmq_w_extra"]],
                             b=lay["kmq_b"], out_dtype=jnp.bfloat16,
                             row_cap=_NODE_ROW_CAP, keep_padded=True)  # (np_, 3hp)
        node_k = node_kmq[:, :hp]
        node_m = node_kmq[:, hp:2 * hp]
        node_q = node_kmq[:, 2 * hp:]
        # edge-side [key|msg] (edge_emb reused; bias-free, epilogue-free kernel)
        edge_km = linear_op([edge_emb], [lay["km_w_edge"]],
                            out_dtype=jnp.bfloat16,
                            row_cap=_EDGE_ROW_CAP, keep_padded=True)   # (ep, 2hp)

        # index-driven gathers straight into the padded edge layout
        q_e = jnp.take(node_q, src_p, axis=0)
        k_d = jnp.take(node_k, dst_p, axis=0)
        m_s = jnp.take(node_m, src_p, axis=0)

        # per-head scores: one MXU matmul, lane-dense (ep, 128) output
        scores = attention_scores(q_e, k_d, edge_km, pp["score_proj"], hp)
        s = scores[:E_total, :head_count]

        # segment softmax over source nodes with PER-SEGMENT max (stable);
        # self-loops guarantee every source segment is non-empty
        seg_max = jax.ops.segment_max(s, src, num_segments=N)
        shifted = jnp.exp(s - seg_max[src])
        denom = jax.ops.segment_sum(shifted, src, num_segments=N)[src]
        alpha = shifted / (denom + 1e-16) * deg_e[:, None]           # (E_total, Hh)
        alpha_pad = jnp.pad(alpha.astype(jnp.bfloat16),
                            ((0, pad_e), (0, _LANE - head_count)))   # (ep, 128)

        # alpha-weighted messages (MXU head expansion) + scatter-add aggregation
        wm = weighted_messages(m_s, edge_km, alpha_pad, pp["head_expand"], hp)
        aggr = jax.ops.segment_sum(wm, dst_p, num_segments=np_)      # (np_, hp)

        # fused Linear -> BN -> ReLU -> Linear -> GELU; dropout = identity (eval)
        X = mlp_gelu(aggr, lay["mlp_w1"], lay["mlp_b1"], lay["mlp_s"],
                     lay["mlp_t"], lay["mlp_w2"], lay["mlp_b2"],
                     out_dtype=jnp.bfloat16, row_cap=_NODE_ROW_CAP,
                     keep_padded=True)                               # (np_, hp) bf16

    # output = GELU(Vh(H) + Vx(X)); final Dropout identity in eval mode
    H_p = _pad_rows(_pad_cols(H.reshape(N, h), hp), np_)
    out = linear_op([H_p, X], [pp["vh_w"], pp["vx_w"]], b=pp["v_b"],
                    act="gelu", out_dtype=jnp.float32,
                    row_cap=_NODE_ROW_CAP, keep_padded=True)
    return out[:N, :h].reshape(B, n_node, h)


# ---------------------------------------------------------------------------
if __name__ == "__main__":
    B, n_node, hidden = 2, 8, 32
    n_ntype, n_etype, k_layers, head_count = 4, 6, 2, 4
    E = 12

    root = jax.random.PRNGKey(0)
    kp, k1, k2, k3, k4, k5 = jax.random.split(root, 6)

    params = init_params(kp, hidden, n_ntype, n_etype, k_layers)
    pp = prepare_params(params, hidden, n_ntype, n_etype, head_count)

    H = jax.random.normal(k1, (B, n_node, hidden), jnp.float32)
    node_type = jax.random.randint(k2, (B, n_node), 0, n_ntype)
    node_score = jax.random.uniform(k3, (B, n_node, 1), jnp.float32)
    edge_index = jax.random.randint(k4, (2, E), 0, B * n_node)
    edge_type = jax.random.randint(k5, (E,), 0, n_etype)

    fwd = jax.jit(qagnn_forward,
                  static_argnames=("n_ntype", "n_etype", "head_count", "hidden"))
    out = fwd(pp, H, edge_index, edge_type, node_type, node_score,
              n_ntype=n_ntype, n_etype=n_etype, head_count=head_count,
              hidden=hidden)
    jax.block_until_ready(out)
    assert out.shape == (B, n_node, hidden)
    assert bool(jnp.all(jnp.isfinite(out)))
    print("KERNEL_OK")
</pallas_src>

<mosaic_0001>
module attributes {stable_mosaic.version = 11 : i64} {
  func.func @_linear_kernel(%arg0: i32, %arg1: memref<16x128xbf16, #tpu.memory_space<vmem>>, %arg2: memref<16x128xbf16, #tpu.memory_space<vmem>>, %arg3: memref<128x384xbf16, #tpu.memory_space<vmem>>, %arg4: memref<128x384xbf16, #tpu.memory_space<vmem>>, %arg5: memref<1x384xf32, #tpu.memory_space<vmem>>, %arg6: memref<16x384xbf16, #tpu.memory_space<vmem>>) attributes {dimension_semantics = [#tpu.dimension_semantics<parallel>], iteration_bounds = array<i64: 1>, scalar_prefetch = 0 : i64, scratch_operands = 0 : i64, tpu.core_type = #tpu.core_type<tc>, window_params = [{transform_indices = @transform_0, window_bounds = array<i64: 16, 128>}, {transform_indices = @transform_1, window_bounds = array<i64: 16, 128>}, {pipeline_mode = #tpu.pipeline_mode<synchronous>, transform_indices = @transform_2, window_bounds = array<i64: 128, 384>}, {pipeline_mode = #tpu.pipeline_mode<synchronous>, transform_indices = @transform_3, window_bounds = array<i64: 128, 384>}, {pipeline_mode = #tpu.pipeline_mode<synchronous>, transform_indices = @transform_4, window_bounds = array<i64: 1, 384>}, {transform_indices = @transform_5, window_bounds = array<i64: 16, 384>}]} {
    %c0 = arith.constant 0 : index
    %c0_0 = arith.constant 0 : index
    %0 = vector.load %arg1[%c0, %c0_0] : memref<16x128xbf16, #tpu.memory_space<vmem>>, vector<16x128xbf16>
    %c0_1 = arith.constant 0 : index
    %c0_2 = arith.constant 0 : index
    %1 = vector.load %arg3[%c0_1, %c0_2] : memref<128x384xbf16, #tpu.memory_space<vmem>>, vector<128x384xbf16>
    %cst = arith.constant dense<0.000000e+00> : vector<16x384xf32>
    %2 = tpu.matmul %0, %1, %cst {dimension_numbers = #tpu.dot_dimension_numbers<[1], [0], [0], [1], [0, 0, 1, 1], [], []>} : vector<16x128xbf16>, vector<128x384xbf16>, vector<16x384xf32> -> vector<16x384xf32>
    %c0_3 = arith.constant 0 : index
    %c0_4 = arith.constant 0 : index
    %3 = vector.load %arg2[%c0_3, %c0_4] : memref<16x128xbf16, #tpu.memory_space<vmem>>, vector<16x128xbf16>
    %c0_5 = arith.constant 0 : index
    %c0_6 = arith.constant 0 : index
    %4 = vector.load %arg4[%c0_5, %c0_6] : memref<128x384xbf16, #tpu.memory_space<vmem>>, vector<128x384xbf16>
    %cst_7 = arith.constant dense<0.000000e+00> : vector<16x384xf32>
    %5 = tpu.matmul %3, %4, %cst_7 {dimension_numbers = #tpu.dot_dimension_numbers<[1], [0], [0], [1], [0, 0, 1, 1], [], []>} : vector<16x128xbf16>, vector<128x384xbf16>, vector<16x384xf32> -> vector<16x384xf32>
    %6 = arith.addf %2, %5 : vector<16x384xf32>
    %c0_8 = arith.constant 0 : index
    %c0_9 = arith.constant 0 : index
    %7 = vector.load %arg5[%c0_8, %c0_9] : memref<1x384xf32, #tpu.memory_space<vmem>>, vector<1x384xf32>
    %8 = vector.broadcast %7 : vector<1x384xf32> to vector<16x384xf32>
    %9 = arith.addf %6, %8 : vector<16x384xf32>
    %10 = arith.truncf %9 : vector<16x384xf32> to vector<16x384xbf16>
    %c0_10 = arith.constant 0 : index
    %c0_11 = arith.constant 0 : index
    %11 = vector.load %arg6[%c0_10, %c0_11] : memref<16x384xbf16, #tpu.memory_space<vmem>>, vector<16x384xbf16>
    tpu.vector_store %arg6[%c0_10, %c0_11], %10 {strides = array<i32>} : memref<16x384xbf16, #tpu.memory_space<vmem>>, vector<16x384xbf16>,
    return
  }
  func.func @transform_0(%arg0: i32) -> (i32, i32) {
    %c0_i32 = arith.constant 0 : i32
    %c0_i32_0 = arith.constant 0 : i32
    return %arg0, %c0_i32 : i32, i32
  }
  func.func @transform_1(%arg0: i32) -> (i32, i32) {
    %c0_i32 = arith.constant 0 : i32
    %c0_i32_0 = arith.constant 0 : i32
    return %arg0, %c0_i32 : i32, i32
  }
  func.func @transform_2(%arg0: i32) -> (i32, i32) {
    %c0_i32 = arith.constant 0 : i32
    %c0_i32_0 = arith.constant 0 : i32
    %c0_i32_1 = arith.constant 0 : i32
    return %c0_i32, %c0_i32_0 : i32, i32
  }
  func.func @transform_3(%arg0: i32) -> (i32, i32) {
    %c0_i32 = arith.constant 0 : i32
    %c0_i32_0 = arith.constant 0 : i32
    %c0_i32_1 = arith.constant 0 : i32
    return %c0_i32, %c0_i32_0 : i32, i32
  }
  func.func @transform_4(%arg0: i32) -> (i32, i32) {
    %c0_i32 = arith.constant 0 : i32
    %c0_i32_0 = arith.constant 0 : i32
    %c0_i32_1 = arith.constant 0 : i32
    return %c0_i32, %c0_i32_0 : i32, i32
  }
  func.func @transform_5(%arg0: i32) -> (i32, i32) {
    %c0_i32 = arith.constant 0 : i32
    %c0_i32_0 = arith.constant 0 : i32
    return %arg0, %c0_i32 : i32, i32
  }
}

module attributes {stable_mosaic.version = 11 : i64} {
  func.func @_linear_kernel(%arg0: i32, %arg1: memref<16x128xbf16, #tpu.memory_space<vmem>>, %arg2: memref<16x128xbf16, #tpu.memory_space<vmem>>, %arg3: memref<128x128xbf16, #tpu.memory_space<vmem>>, %arg4: memref<128x128xbf16, #tpu.memory_space<vmem>>, %arg5: memref<1x128xf32, #tpu.memory_space<vmem>>, %arg6: memref<16x128xbf16, #tpu.memory_space<vmem>>) attributes {dimension_semantics = [#tpu.dimension_semantics<parallel>], iteration_bounds = array<i64: 1>, scalar_prefetch = 0 : i64, scratch_operands = 0 : i64, tpu.core_type = #tpu.core_type<tc>, window_params = [{transform_indices = @transform_0, window_bounds = array<i64: 16, 128>}, {transform_indices = @transform_1, window_bounds = array<i64: 16, 128>}, {pipeline_mode = #tpu.pipeline_mode<synchronous>, transform_indices = @transform_2, window_bounds = array<i64: 128, 128>}, {pipeline_mode = #tpu.pipeline_mode<synchronous>, transform_indices = @transform_3, window_bounds = array<i64: 128, 128>}, {pipeline_mode = #tpu.pipeline_mode<synchronous>, transform_indices = @transform_4, window_bounds = array<i64: 1, 128>}, {transform_indices = @transform_5, window_bounds = array<i64: 16, 128>}]} {
    %c0 = arith.constant 0 : index
    %c0_0 = arith.constant 0 : index
    %0 = vector.load %arg1[%c0, %c0_0] : memref<16x128xbf16, #tpu.memory_space<vmem>>, vector<16x128xbf16>
    %c0_1 = arith.constant 0 : index
    %c0_2 = arith.constant 0 : index
    %1 = vector.load %arg3[%c0_1, %c0_2] : memref<128x128xbf16, #tpu.memory_space<vmem>>, vector<128x128xbf16>
    %cst = arith.constant dense<0.000000e+00> : vector<16x128xf32>
    %2 = tpu.matmul %0, %1, %cst {dimension_numbers = #tpu.dot_dimension_numbers<[1], [0], [0], [1], [0, 0, 1, 1], [], []>} : vector<16x128xbf16>, vector<128x128xbf16>, vector<16x128xf32> -> vector<16x128xf32>
    %c0_3 = arith.constant 0 : index
    %c0_4 = arith.constant 0 : index
    %3 = vector.load %arg2[%c0_3, %c0_4] : memref<16x128xbf16, #tpu.memory_space<vmem>>, vector<16x128xbf16>
    %c0_5 = arith.constant 0 : index
    %c0_6 = arith.constant 0 : index
    %4 = vector.load %arg4[%c0_5, %c0_6] : memref<128x128xbf16, #tpu.memory_space<vmem>>, vector<128x128xbf16>
    %cst_7 = arith.constant dense<0.000000e+00> : vector<16x128xf32>
    %5 = tpu.matmul %3, %4, %cst_7 {dimension_numbers = #tpu.dot_dimension_numbers<[1], [0], [0], [1], [0, 0, 1, 1], [], []>} : vector<16x128xbf16>, vector<128x128xbf16>, vector<16x128xf32> -> vector<16x128xf32>
    %6 = arith.addf %2, %5 : vector<16x128xf32>
    %c0_8 = arith.constant 0 : index
    %c0_9 = arith.constant 0 : index
    %7 = vector.load %arg5[%c0_8, %c0_9] : memref<1x128xf32, #tpu.memory_space<vmem>>, vector<1x128xf32>
    %8 = vector.broadcast %7 : vector<1x128xf32> to vector<16x128xf32>
    %9 = arith.addf %6, %8 : vector<16x128xf32>
    %cst_10 = arith.constant 5.000000e-01 : f32
    %10 = vector.broadcast %cst_10 : f32 to vector<16x128xf32>
    %11 = arith.mulf %10, %9 : vector<16x128xf32>
    %cst_11 = arith.constant 4.471500e-02 : f32
    %12 = vector.broadcast %cst_11 : f32 to vector<16x128xf32>
    %13 = arith.mulf %12, %9 : vector<16x128xf32>
    %14 = arith.mulf %13, %9 : vector<16x128xf32>
    %15 = arith.mulf %14, %9 : vector<16x128xf32>
    %16 = arith.addf %9, %15 : vector<16x128xf32>
    %cst_12 = arith.constant 0.797884583 : f32
    %17 = vector.broadcast %cst_12 : f32 to vector<16x128xf32>
    %18 = arith.mulf %17, %16 : vector<16x128xf32>
    %19 = math.tanh %18 : vector<16x128xf32>
    %cst_13 = arith.constant 1.000000e+00 : f32
    %20 = vector.broadcast %cst_13 : f32 to vector<16x128xf32>
    %21 = arith.addf %20, %19 : vector<16x128xf32>
    %22 = arith.mulf %11, %21 : vector<16x128xf32>
    %23 = arith.truncf %22 : vector<16x128xf32> to vector<16x128xbf16>
    %c0_14 = arith.constant 0 : index
    %c0_15 = arith.constant 0 : index
    %24 = vector.load %arg6[%c0_14, %c0_15] : memref<16x128xbf16, #tpu.memory_space<vmem>>, vector<16x128xbf16>
    tpu.vector_store %arg6[%c0_14, %c0_15], %23 {strides = array<i32>} : memref<16x128xbf16, #tpu.memory_space<vmem>>, vector<16x128xbf16>,
    return
  }
  func.func @transform_0(%arg0: i32) -> (i32, i32) {
    %c0_i32 = arith.constant 0 : i32
    %c0_i32_0 = arith.constant 0 : i32
    return %arg0, %c0_i32 : i32, i32
  }
  func.func @transform_1(%arg0: i32) -> (i32, i32) {
    %c0_i32 = arith.constant 0 : i32
    %c0_i32_0 = arith.constant 0 : i32
    return %arg0, %c0_i32 : i32, i32
  }
  func.func @transform_2(%arg0: i32) -> (i32, i32) {
    %c0_i32 = arith.constant 0 : i32
    %c0_i32_0 = arith.constant 0 : i32
    %c0_i32_1 = arith.constant 0 : i32
    return %c0_i32, %c0_i32_0 : i32, i32
  }
  func.func @transform_3(%arg0: i32) -> (i32, i32) {
    %c0_i32 = arith.constant 0 : i32
    %c0_i32_0 = arith.constant 0 : i32
    %c0_i32_1 = arith.constant 0 : i32
    return %c0_i32, %c0_i32_0 : i32, i32
  }
  func.func @transform_4(%arg0: i32) -> (i32, i32) {
    %c0_i32 = arith.constant 0 : i32
    %c0_i32_0 = arith.constant 0 : i32
    %c0_i32_1 = arith.constant 0 : i32
    return %c0_i32, %c0_i32_0 : i32, i32
  }
  func.func @transform_5(%arg0: i32) -> (i32, i32) {
    %c0_i32 = arith.constant 0 : i32
    %c0_i32_0 = arith.constant 0 : i32
    return %arg0, %c0_i32 : i32, i32
  }
}

module attributes {stable_mosaic.version = 11 : i64} {
  func.func @_linear_kernel(%arg0: i32, %arg1: memref<16x128xbf16, #tpu.memory_space<vmem>>, %arg2: memref<128x128xbf16, #tpu.memory_space<vmem>>, %arg3: memref<1x128xf32, #tpu.memory_space<vmem>>, %arg4: memref<16x128xbf16, #tpu.memory_space<vmem>>) attributes {dimension_semantics = [#tpu.dimension_semantics<parallel>], iteration_bounds = array<i64: 2>, scalar_prefetch = 0 : i64, scratch_operands = 0 : i64, tpu.core_type = #tpu.core_type<tc>, window_params = [{transform_indices = @transform_0, window_bounds = array<i64: 16, 128>}, {pipeline_mode = #tpu.pipeline_mode<synchronous>, transform_indices = @transform_1, window_bounds = array<i64: 128, 128>}, {pipeline_mode = #tpu.pipeline_mode<synchronous>, transform_indices = @transform_2, window_bounds = array<i64: 1, 128>}, {transform_indices = @transform_3, window_bounds = array<i64: 16, 128>}]} {
    %c0 = arith.constant 0 : index
    %c0_0 = arith.constant 0 : index
    %0 = vector.load %arg1[%c0, %c0_0] : memref<16x128xbf16, #tpu.memory_space<vmem>>, vector<16x128xbf16>
    %c0_1 = arith.constant 0 : index
    %c0_2 = arith.constant 0 : index
    %1 = vector.load %arg2[%c0_1, %c0_2] : memref<128x128xbf16, #tpu.memory_space<vmem>>, vector<128x128xbf16>
    %cst = arith.constant dense<0.000000e+00> : vector<16x128xf32>
    %2 = tpu.matmul %0, %1, %cst {dimension_numbers = #tpu.dot_dimension_numbers<[1], [0], [0], [1], [0, 0, 1, 1], [], []>} : vector<16x128xbf16>, vector<128x128xbf16>, vector<16x128xf32> -> vector<16x128xf32>
    %c0_3 = arith.constant 0 : index
    %c0_4 = arith.constant 0 : index
    %3 = vector.load %arg3[%c0_3, %c0_4] : memref<1x128xf32, #tpu.memory_space<vmem>>, vector<1x128xf32>
    %4 = vector.broadcast %3 : vector<1x128xf32> to vector<16x128xf32>
    %5 = arith.addf %2, %4 : vector<16x128xf32>
    %6 = arith.truncf %5 : vector<16x128xf32> to vector<16x128xbf16>
    %c0_5 = arith.constant 0 : index
    %c0_6 = arith.constant 0 : index
    %7 = vector.load %arg4[%c0_5, %c0_6] : memref<16x128xbf16, #tpu.memory_space<vmem>>, vector<16x128xbf16>
    tpu.vector_store %arg4[%c0_5, %c0_6], %6 {strides = array<i32>} : memref<16x128xbf16, #tpu.memory_space<vmem>>, vector<16x128xbf16>,
    return
  }
  func.func @transform_0(%arg0: i32) -> (i32, i32) {
    %c0_i32 = arith.constant 0 : i32
    %c0_i32_0 = arith.constant 0 : i32
    return %arg0, %c0_i32 : i32, i32
  }
  func.func @transform_1(%arg0: i32) -> (i32, i32) {
    %c0_i32 = arith.constant 0 : i32
    %c0_i32_0 = arith.constant 0 : i32
    %c0_i32_1 = arith.constant 0 : i32
    return %c0_i32, %c0_i32_0 : i32, i32
  }
  func.func @transform_2(%arg0: i32) -> (i32, i32) {
    %c0_i32 = arith.constant 0 : i32
    %c0_i32_0 = arith.constant 0 : i32
    %c0_i32_1 = arith.constant 0 : i32
    return %c0_i32, %c0_i32_0 : i32, i32
  }
  func.func @transform_3(%arg0: i32) -> (i32, i32) {
    %c0_i32 = arith.constant 0 : i32
    %c0_i32_0 = arith.constant 0 : i32
    return %arg0, %c0_i32 : i32, i32
  }
}

module attributes {stable_mosaic.version = 11 : i64} {
  func.func @_linear_kernel(%arg0: i32, %arg1: memref<16x128xbf16, #tpu.memory_space<vmem>>, %arg2: memref<128x256xbf16, #tpu.memory_space<vmem>>, %arg3: memref<16x256xbf16, #tpu.memory_space<vmem>>) attributes {dimension_semantics = [#tpu.dimension_semantics<parallel>], iteration_bounds = array<i64: 2>, scalar_prefetch = 0 : i64, scratch_operands = 0 : i64, tpu.core_type = #tpu.core_type<tc>, window_params = [{transform_indices = @transform_0, window_bounds = array<i64: 16, 128>}, {pipeline_mode = #tpu.pipeline_mode<synchronous>, transform_indices = @transform_1, window_bounds = array<i64: 128, 256>}, {transform_indices = @transform_2, window_bounds = array<i64: 16, 256>}]} {
    %c0 = arith.constant 0 : index
    %c0_0 = arith.constant 0 : index
    %0 = vector.load %arg1[%c0, %c0_0] : memref<16x128xbf16, #tpu.memory_space<vmem>>, vector<16x128xbf16>
    %c0_1 = arith.constant 0 : index
    %c0_2 = arith.constant 0 : index
    %1 = vector.load %arg2[%c0_1, %c0_2] : memref<128x256xbf16, #tpu.memory_space<vmem>>, vector<128x256xbf16>
    %cst = arith.constant dense<0.000000e+00> : vector<16x256xf32>
    %2 = tpu.matmul %0, %1, %cst {dimension_numbers = #tpu.dot_dimension_numbers<[1], [0], [0], [1], [0, 0, 1, 1], [], []>} : vector<16x128xbf16>, vector<128x256xbf16>, vector<16x256xf32> -> vector<16x256xf32>
    %3 = arith.truncf %2 : vector<16x256xf32> to vector<16x256xbf16>
    %c0_3 = arith.constant 0 : index
    %c0_4 = arith.constant 0 : index
    %4 = vector.load %arg3[%c0_3, %c0_4] : memref<16x256xbf16, #tpu.memory_space<vmem>>, vector<16x256xbf16>
    tpu.vector_store %arg3[%c0_3, %c0_4], %3 {strides = array<i32>} : memref<16x256xbf16, #tpu.memory_space<vmem>>, vector<16x256xbf16>,
    return
  }
  func.func @transform_0(%arg0: i32) -> (i32, i32) {
    %c0_i32 = arith.constant 0 : i32
    %c0_i32_0 = arith.constant 0 : i32
    return %arg0, %c0_i32 : i32, i32
  }
  func.func @transform_1(%arg0: i32) -> (i32, i32) {
    %c0_i32 = arith.constant 0 : i32
    %c0_i32_0 = arith.constant 0 : i32
    %c0_i32_1 = arith.constant 0 : i32
    return %c0_i32, %c0_i32_0 : i32, i32
  }
  func.func @transform_2(%arg0: i32) -> (i32, i32) {
    %c0_i32 = arith.constant 0 : i32
    %c0_i32_0 = arith.constant 0 : i32
    return %arg0, %c0_i32 : i32, i32
  }
}

module attributes {stable_mosaic.version = 11 : i64} {
  func.func @_linear_kernel(%arg0: i32, %arg1: memref<16x128xbf16, #tpu.memory_space<vmem>>, %arg2: memref<128x128xbf16, #tpu.memory_space<vmem>>, %arg3: memref<1x128xf32, #tpu.memory_space<vmem>>, %arg4: memref<1x128xf32, #tpu.memory_space<vmem>>, %arg5: memref<1x128xf32, #tpu.memory_space<vmem>>, %arg6: memref<16x128xbf16, #tpu.memory_space<vmem>>) attributes {dimension_semantics = [#tpu.dimension_semantics<parallel>], iteration_bounds = array<i64: 2>, scalar_prefetch = 0 : i64, scratch_operands = 0 : i64, tpu.core_type = #tpu.core_type<tc>, window_params = [{transform_indices = @transform_0, window_bounds = array<i64: 16, 128>}, {pipeline_mode = #tpu.pipeline_mode<synchronous>, transform_indices = @transform_1, window_bounds = array<i64: 128, 128>}, {pipeline_mode = #tpu.pipeline_mode<synchronous>, transform_indices = @transform_2, window_bounds = array<i64: 1, 128>}, {pipeline_mode = #tpu.pipeline_mode<synchronous>, transform_indices = @transform_3, window_bounds = array<i64: 1, 128>}, {pipeline_mode = #tpu.pipeline_mode<synchronous>, transform_indices = @transform_4, window_bounds = array<i64: 1, 128>}, {transform_indices = @transform_5, window_bounds = array<i64: 16, 128>}]} {
    %c0 = arith.constant 0 : index
    %c0_0 = arith.constant 0 : index
    %0 = vector.load %arg1[%c0, %c0_0] : memref<16x128xbf16, #tpu.memory_space<vmem>>, vector<16x128xbf16>
    %c0_1 = arith.constant 0 : index
    %c0_2 = arith.constant 0 : index
    %1 = vector.load %arg2[%c0_1, %c0_2] : memref<128x128xbf16, #tpu.memory_space<vmem>>, vector<128x128xbf16>
    %cst = arith.constant dense<0.000000e+00> : vector<16x128xf32>
    %2 = tpu.matmul %0, %1, %cst {dimension_numbers = #tpu.dot_dimension_numbers<[1], [0], [0], [1], [0, 0, 1, 1], [], []>} : vector<16x128xbf16>, vector<128x128xbf16>, vector<16x128xf32> -> vector<16x128xf32>
    %c0_3 = arith.constant 0 : index
    %c0_4 = arith.constant 0 : index
    %3 = vector.load %arg3[%c0_3, %c0_4] : memref<1x128xf32, #tpu.memory_space<vmem>>, vector<1x128xf32>
    %4 = vector.broadcast %3 : vector<1x128xf32> to vector<16x128xf32>
    %5 = arith.addf %2, %4 : vector<16x128xf32>
    %c0_5 = arith.constant 0 : index
    %c0_6 = arith.constant 0 : index
    %6 = vector.load %arg4[%c0_5, %c0_6] : memref<1x128xf32, #tpu.memory_space<vmem>>, vector<1x128xf32>
    %7 = vector.broadcast %6 : vector<1x128xf32> to vector<16x128xf32>
    %8 = arith.mulf %5, %7 : vector<16x128xf32>
    %c0_7 = arith.constant 0 : index
    %c0_8 = arith.constant 0 : index
    %9 = vector.load %arg5[%c0_7, %c0_8] : memref<1x128xf32, #tpu.memory_space<vmem>>, vector<1x128xf32>
    %10 = vector.broadcast %9 : vector<1x128xf32> to vector<16x128xf32>
    %11 = arith.addf %8, %10 : vector<16x128xf32>
    %cst_9 = arith.constant 0.000000e+00 : f32
    %12 = vector.broadcast %cst_9 : f32 to vector<16x128xf32>
    %13 = arith.maximumf %11, %12 : vector<16x128xf32>
    %14 = arith.truncf %13 : vector<16x128xf32> to vector<16x128xbf16>
    %c0_10 = arith.constant 0 : index
    %c0_11 = arith.constant 0 : index
    %15 = vector.load %arg6[%c0_10, %c0_11] : memref<16x128xbf16, #tpu.memory_space<vmem>>, vector<16x128xbf16>
    tpu.vector_store %arg6[%c0_10, %c0_11], %14 {strides = array<i32>} : memref<16x128xbf16, #tpu.memory_space<vmem>>, vector<16x128xbf16>,
    return
  }
  func.func @transform_0(%arg0: i32) -> (i32, i32) {
    %c0_i32 = arith.constant 0 : i32
    %c0_i32_0 = arith.constant 0 : i32
    return %arg0, %c0_i32 : i32, i32
  }
  func.func @transform_1(%arg0: i32) -> (i32, i32) {
    %c0_i32 = arith.constant 0 : i32
    %c0_i32_0 = arith.constant 0 : i32
    %c0_i32_1 = arith.constant 0 : i32
    return %c0_i32, %c0_i32_0 : i32, i32
  }
  func.func @transform_2(%arg0: i32) -> (i32, i32) {
    %c0_i32 = arith.constant 0 : i32
    %c0_i32_0 = arith.constant 0 : i32
    %c0_i32_1 = arith.constant 0 : i32
    return %c0_i32, %c0_i32_0 : i32, i32
  }
  func.func @transform_3(%arg0: i32) -> (i32, i32) {
    %c0_i32 = arith.constant 0 : i32
    %c0_i32_0 = arith.constant 0 : i32
    %c0_i32_1 = arith.constant 0 : i32
    return %c0_i32, %c0_i32_0 : i32, i32
  }
  func.func @transform_4(%arg0: i32) -> (i32, i32) {
    %c0_i32 = arith.constant 0 : i32
    %c0_i32_0 = arith.constant 0 : i32
    %c0_i32_1 = arith.constant 0 : i32
    return %c0_i32, %c0_i32_0 : i32, i32
  }
  func.func @transform_5(%arg0: i32) -> (i32, i32) {
    %c0_i32 = arith.constant 0 : i32
    %c0_i32_0 = arith.constant 0 : i32
    return %arg0, %c0_i32 : i32, i32
  }
}

module attributes {stable_mosaic.version = 11 : i64} {
  func.func @_attn_score_kernel(%arg0: i32, %arg1: memref<16x128xbf16, #tpu.memory_space<vmem>>, %arg2: memref<16x128xbf16, #tpu.memory_space<vmem>>, %arg3: memref<16x128xbf16, #tpu.memory_space<vmem>>, %arg4: memref<128x128xbf16, #tpu.memory_space<vmem>>, %arg5: memref<16x128xf32, #tpu.memory_space<vmem>>) attributes {dimension_semantics = [#tpu.dimension_semantics<parallel>], iteration_bounds = array<i64: 2>, scalar_prefetch = 0 : i64, scratch_operands = 0 : i64, tpu.core_type = #tpu.core_type<tc>, window_params = [{transform_indices = @transform_0, window_bounds = array<i64: 16, 128>}, {transform_indices = @transform_1, window_bounds = array<i64: 16, 128>}, {transform_indices = @transform_2, window_bounds = array<i64: 16, 128>}, {pipeline_mode = #tpu.pipeline_mode<synchronous>, transform_indices = @transform_3, window_bounds = array<i64: 128, 128>}, {transform_indices = @transform_4, window_bounds = array<i64: 16, 128>}]} {
    %c0 = arith.constant 0 : index
    %c0_0 = arith.constant 0 : index
    %0 = vector.load %arg1[%c0, %c0_0] : memref<16x128xbf16, #tpu.memory_space<vmem>>, vector<16x128xbf16>
    %1 = arith.extf %0 : vector<16x128xbf16> to vector<16x128xf32>
    %c0_1 = arith.constant 0 : index
    %c0_2 = arith.constant 0 : index
    %2 = vector.load %arg2[%c0_1, %c0_2] : memref<16x128xbf16, #tpu.memory_space<vmem>>, vector<16x128xbf16>
    %3 = arith.extf %2 : vector<16x128xbf16> to vector<16x128xf32>
    %c0_3 = arith.constant 0 : index
    %c0_4 = arith.constant 0 : index
    %4 = vector.load %arg3[%c0_3, %c0_4] : memref<16x128xbf16, #tpu.memory_space<vmem>>, vector<16x128xbf16>
    %5 = arith.extf %4 : vector<16x128xbf16> to vector<16x128xf32>
    %6 = arith.addf %3, %5 : vector<16x128xf32>
    %7 = arith.mulf %1, %6 : vector<16x128xf32>
    %8 = arith.truncf %7 : vector<16x128xf32> to vector<16x128xbf16>
    %c0_5 = arith.constant 0 : index
    %c0_6 = arith.constant 0 : index
    %9 = vector.load %arg4[%c0_5, %c0_6] : memref<128x128xbf16, #tpu.memory_space<vmem>>, vector<128x128xbf16>
    %cst = arith.constant dense<0.000000e+00> : vector<16x128xf32>
    %10 = tpu.matmul %8, %9, %cst {dimension_numbers = #tpu.dot_dimension_numbers<[1], [0], [0], [1], [0, 0, 1, 1], [], []>} : vector<16x128xbf16>, vector<128x128xbf16>, vector<16x128xf32> -> vector<16x128xf32>
    %c0_7 = arith.constant 0 : index
    %c0_8 = arith.constant 0 : index
    %11 = vector.load %arg5[%c0_7, %c0_8] : memref<16x128xf32, #tpu.memory_space<vmem>>, vector<16x128xf32>
    tpu.vector_store %arg5[%c0_7, %c0_8], %10 {strides = array<i32>} : memref<16x128xf32, #tpu.memory_space<vmem>>, vector<16x128xf32>,
    return
  }
  func.func @transform_0(%arg0: i32) -> (i32, i32) {
    %c0_i32 = arith.constant 0 : i32
    %c0_i32_0 = arith.constant 0 : i32
    return %arg0, %c0_i32 : i32, i32
  }
  func.func @transform_1(%arg0: i32) -> (i32, i32) {
    %c0_i32 = arith.constant 0 : i32
    %c0_i32_0 = arith.constant 0 : i32
    return %arg0, %c0_i32 : i32, i32
  }
  func.func @transform_2(%arg0: i32) -> (i32, i32) {
    %c0_i32 = arith.constant 0 : i32
    %c0_i32_0 = arith.constant 0 : i32
    return %arg0, %c0_i32 : i32, i32
  }
  func.func @transform_3(%arg0: i32) -> (i32, i32) {
    %c0_i32 = arith.constant 0 : i32
    %c0_i32_0 = arith.constant 0 : i32
    %c0_i32_1 = arith.constant 0 : i32
    return %c0_i32, %c0_i32_0 : i32, i32
  }
  func.func @transform_4(%arg0: i32) -> (i32, i32) {
    %c0_i32 = arith.constant 0 : i32
    %c0_i32_0 = arith.constant 0 : i32
    return %arg0, %c0_i32 : i32, i32
  }
}

module attributes {stable_mosaic.version = 11 : i64} {
  func.func @_weighted_msg_kernel(%arg0: i32, %arg1: memref<16x128xbf16, #tpu.memory_space<vmem>>, %arg2: memref<16x128xbf16, #tpu.memory_space<vmem>>, %arg3: memref<16x128xbf16, #tpu.memory_space<vmem>>, %arg4: memref<128x128xbf16, #tpu.memory_space<vmem>>, %arg5: memref<16x128xf32, #tpu.memory_space<vmem>>) attributes {dimension_semantics = [#tpu.dimension_semantics<parallel>], iteration_bounds = array<i64: 2>, scalar_prefetch = 0 : i64, scratch_operands = 0 : i64, tpu.core_type = #tpu.core_type<tc>, window_params = [{transform_indices = @transform_0, window_bounds = array<i64: 16, 128>}, {transform_indices = @transform_1, window_bounds = array<i64: 16, 128>}, {transform_indices = @transform_2, window_bounds = array<i64: 16, 128>}, {pipeline_mode = #tpu.pipeline_mode<synchronous>, transform_indices = @transform_3, window_bounds = array<i64: 128, 128>}, {transform_indices = @transform_4, window_bounds = array<i64: 16, 128>}]} {
    %c0 = arith.constant 0 : index
    %c0_0 = arith.constant 0 : index
    %0 = vector.load %arg1[%c0, %c0_0] : memref<16x128xbf16, #tpu.memory_space<vmem>>, vector<16x128xbf16>
    %1 = arith.extf %0 : vector<16x128xbf16> to vector<16x128xf32>
    %c0_1 = arith.constant 0 : index
    %c0_2 = arith.constant 0 : index
    %2 = vector.load %arg2[%c0_1, %c0_2] : memref<16x128xbf16, #tpu.memory_space<vmem>>, vector<16x128xbf16>
    %3 = arith.extf %2 : vector<16x128xbf16> to vector<16x128xf32>
    %4 = arith.addf %1, %3 : vector<16x128xf32>
    %c0_3 = arith.constant 0 : index
    %c0_4 = arith.constant 0 : index
    %5 = vector.load %arg3[%c0_3, %c0_4] : memref<16x128xbf16, #tpu.memory_space<vmem>>, vector<16x128xbf16>
    %c0_5 = arith.constant 0 : index
    %c0_6 = arith.constant 0 : index
    %6 = vector.load %arg4[%c0_5, %c0_6] : memref<128x128xbf16, #tpu.memory_space<vmem>>, vector<128x128xbf16>
    %cst = arith.constant dense<0.000000e+00> : vector<16x128xf32>
    %7 = tpu.matmul %5, %6, %cst {dimension_numbers = #tpu.dot_dimension_numbers<[1], [0], [0], [1], [0, 0, 1, 1], [], []>} : vector<16x128xbf16>, vector<128x128xbf16>, vector<16x128xf32> -> vector<16x128xf32>
    %8 = arith.mulf %4, %7 : vector<16x128xf32>
    %c0_7 = arith.constant 0 : index
    %c0_8 = arith.constant 0 : index
    %9 = vector.load %arg5[%c0_7, %c0_8] : memref<16x128xf32, #tpu.memory_space<vmem>>, vector<16x128xf32>
    tpu.vector_store %arg5[%c0_7, %c0_8], %8 {strides = array<i32>} : memref<16x128xf32, #tpu.memory_space<vmem>>, vector<16x128xf32>,
    return
  }
  func.func @transform_0(%arg0: i32) -> (i32, i32) {
    %c0_i32 = arith.constant 0 : i32
    %c0_i32_0 = arith.constant 0 : i32
    return %arg0, %c0_i32 : i32, i32
  }
  func.func @transform_1(%arg0: i32) -> (i32, i32) {
    %c1_i32 = arith.constant 1 : i32
    %c0_i32 = arith.constant 0 : i32
    return %arg0, %c1_i32 : i32, i32
  }
  func.func @transform_2(%arg0: i32) -> (i32, i32) {
    %c0_i32 = arith.constant 0 : i32
    %c0_i32_0 = arith.constant 0 : i32
    return %arg0, %c0_i32 : i32, i32
  }
  func.func @transform_3(%arg0: i32) -> (i32, i32) {
    %c0_i32 = arith.constant 0 : i32
    %c0_i32_0 = arith.constant 0 : i32
    %c0_i32_1 = arith.constant 0 : i32
    return %c0_i32, %c0_i32_0 : i32, i32
  }
  func.func @transform_4(%arg0: i32) -> (i32, i32) {
    %c0_i32 = arith.constant 0 : i32
    %c0_i32_0 = arith.constant 0 : i32
    return %arg0, %c0_i32 : i32, i32
  }
}

module attributes {stable_mosaic.version = 11 : i64} {
  func.func @_mlp_gelu_kernel(%arg0: i32, %arg1: memref<16x128xbf16, #tpu.memory_space<vmem>>, %arg2: memref<128x128xbf16, #tpu.memory_space<vmem>>, %arg3: memref<1x128xf32, #tpu.memory_space<vmem>>, %arg4: memref<1x128xf32, #tpu.memory_space<vmem>>, %arg5: memref<1x128xf32, #tpu.memory_space<vmem>>, %arg6: memref<128x128xbf16, #tpu.memory_space<vmem>>, %arg7: memref<1x128xf32, #tpu.memory_space<vmem>>, %arg8: memref<16x128xbf16, #tpu.memory_space<vmem>>) attributes {dimension_semantics = [#tpu.dimension_semantics<parallel>], iteration_bounds = array<i64: 1>, scalar_prefetch = 0 : i64, scratch_operands = 0 : i64, tpu.core_type = #tpu.core_type<tc>, window_params = [{transform_indices = @transform_0, window_bounds = array<i64: 16, 128>}, {pipeline_mode = #tpu.pipeline_mode<synchronous>, transform_indices = @transform_1, window_bounds = array<i64: 128, 128>}, {pipeline_mode = #tpu.pipeline_mode<synchronous>, transform_indices = @transform_2, window_bounds = array<i64: 1, 128>}, {pipeline_mode = #tpu.pipeline_mode<synchronous>, transform_indices = @transform_3, window_bounds = array<i64: 1, 128>}, {pipeline_mode = #tpu.pipeline_mode<synchronous>, transform_indices = @transform_4, window_bounds = array<i64: 1, 128>}, {pipeline_mode = #tpu.pipeline_mode<synchronous>, transform_indices = @transform_5, window_bounds = array<i64: 128, 128>}, {pipeline_mode = #tpu.pipeline_mode<synchronous>, transform_indices = @transform_6, window_bounds = array<i64: 1, 128>}, {transform_indices = @transform_7, window_bounds = array<i64: 16, 128>}]} {
    %c0 = arith.constant 0 : index
    %c0_0 = arith.constant 0 : index
    %0 = vector.load %arg1[%c0, %c0_0] : memref<16x128xbf16, #tpu.memory_space<vmem>>, vector<16x128xbf16>
    %c0_1 = arith.constant 0 : index
    %c0_2 = arith.constant 0 : index
    %1 = vector.load %arg2[%c0_1, %c0_2] : memref<128x128xbf16, #tpu.memory_space<vmem>>, vector<128x128xbf16>
    %cst = arith.constant dense<0.000000e+00> : vector<16x128xf32>
    %2 = tpu.matmul %0, %1, %cst {dimension_numbers = #tpu.dot_dimension_numbers<[1], [0], [0], [1], [0, 0, 1, 1], [], []>} : vector<16x128xbf16>, vector<128x128xbf16>, vector<16x128xf32> -> vector<16x128xf32>
    %c0_3 = arith.constant 0 : index
    %c0_4 = arith.constant 0 : index
    %3 = vector.load %arg3[%c0_3, %c0_4] : memref<1x128xf32, #tpu.memory_space<vmem>>, vector<1x128xf32>
    %4 = vector.broadcast %3 : vector<1x128xf32> to vector<16x128xf32>
    %5 = arith.addf %2, %4 : vector<16x128xf32>
    %c0_5 = arith.constant 0 : index
    %c0_6 = arith.constant 0 : index
    %6 = vector.load %arg4[%c0_5, %c0_6] : memref<1x128xf32, #tpu.memory_space<vmem>>, vector<1x128xf32>
    %7 = vector.broadcast %6 : vector<1x128xf32> to vector<16x128xf32>
    %8 = arith.mulf %5, %7 : vector<16x128xf32>
    %c0_7 = arith.constant 0 : index
    %c0_8 = arith.constant 0 : index
    %9 = vector.load %arg5[%c0_7, %c0_8] : memref<1x128xf32, #tpu.memory_space<vmem>>, vector<1x128xf32>
    %10 = vector.broadcast %9 : vector<1x128xf32> to vector<16x128xf32>
    %11 = arith.addf %8, %10 : vector<16x128xf32>
    %cst_9 = arith.constant 0.000000e+00 : f32
    %12 = vector.broadcast %cst_9 : f32 to vector<16x128xf32>
    %13 = arith.maximumf %11, %12 : vector<16x128xf32>
    %14 = arith.truncf %13 : vector<16x128xf32> to vector<16x128xbf16>
    %c0_10 = arith.constant 0 : index
    %c0_11 = arith.constant 0 : index
    %15 = vector.load %arg6[%c0_10, %c0_11] : memref<128x128xbf16, #tpu.memory_space<vmem>>, vector<128x128xbf16>
    %cst_12 = arith.constant dense<0.000000e+00> : vector<16x128xf32>
    %16 = tpu.matmul %14, %15, %cst_12 {dimension_numbers = #tpu.dot_dimension_numbers<[1], [0], [0], [1], [0, 0, 1, 1], [], []>} : vector<16x128xbf16>, vector<128x128xbf16>, vector<16x128xf32> -> vector<16x128xf32>
    %c0_13 = arith.constant 0 : index
    %c0_14 = arith.constant 0 : index
    %17 = vector.load %arg7[%c0_13, %c0_14] : memref<1x128xf32, #tpu.memory_space<vmem>>, vector<1x128xf32>
    %18 = vector.broadcast %17 : vector<1x128xf32> to vector<16x128xf32>
    %19 = arith.addf %16, %18 : vector<16x128xf32>
    %cst_15 = arith.constant 5.000000e-01 : f32
    %20 = vector.broadcast %cst_15 : f32 to vector<16x128xf32>
    %21 = arith.mulf %20, %19 : vector<16x128xf32>
    %cst_16 = arith.constant 4.471500e-02 : f32
    %22 = vector.broadcast %cst_16 : f32 to vector<16x128xf32>
    %23 = arith.mulf %22, %19 : vector<16x128xf32>
    %24 = arith.mulf %23, %19 : vector<16x128xf32>
    %25 = arith.mulf %24, %19 : vector<16x128xf32>
    %26 = arith.addf %19, %25 : vector<16x128xf32>
    %cst_17 = arith.constant 0.797884583 : f32
    %27 = vector.broadcast %cst_17 : f32 to vector<16x128xf32>
    %28 = arith.mulf %27, %26 : vector<16x128xf32>
    %29 = math.tanh %28 : vector<16x128xf32>
    %cst_18 = arith.constant 1.000000e+00 : f32
    %30 = vector.broadcast %cst_18 : f32 to vector<16x128xf32>
    %31 = arith.addf %30, %29 : vector<16x128xf32>
    %32 = arith.mulf %21, %31 : vector<16x128xf32>
    %33 = arith.truncf %32 : vector<16x128xf32> to vector<16x128xbf16>
    %c0_19 = arith.constant 0 : index
    %c0_20 = arith.constant 0 : index
    %34 = vector.load %arg8[%c0_19, %c0_20] : memref<16x128xbf16, #tpu.memory_space<vmem>>, vector<16x128xbf16>
    tpu.vector_store %arg8[%c0_19, %c0_20], %33 {strides = array<i32>} : memref<16x128xbf16, #tpu.memory_space<vmem>>, vector<16x128xbf16>,
    return
  }
  func.func @transform_0(%arg0: i32) -> (i32, i32) {
    %c0_i32 = arith.constant 0 : i32
    %c0_i32_0 = arith.constant 0 : i32
    return %arg0, %c0_i32 : i32, i32
  }
  func.func @transform_1(%arg0: i32) -> (i32, i32) {
    %c0_i32 = arith.constant 0 : i32
    %c0_i32_0 = arith.constant 0 : i32
    %c0_i32_1 = arith.constant 0 : i32
    return %c0_i32, %c0_i32_0 : i32, i32
  }
  func.func @transform_2(%arg0: i32) -> (i32, i32) {
    %c0_i32 = arith.constant 0 : i32
    %c0_i32_0 = arith.constant 0 : i32
    %c0_i32_1 = arith.constant 0 : i32
    return %c0_i32, %c0_i32_0 : i32, i32
  }
  func.func @transform_3(%arg0: i32) -> (i32, i32) {
    %c0_i32 = arith.constant 0 : i32
    %c0_i32_0 = arith.constant 0 : i32
    %c0_i32_1 = arith.constant 0 : i32
    return %c0_i32, %c0_i32_0 : i32, i32
  }
  func.func @transform_4(%arg0: i32) -> (i32, i32) {
    %c0_i32 = arith.constant 0 : i32
    %c0_i32_0 = arith.constant 0 : i32
    %c0_i32_1 = arith.constant 0 : i32
    return %c0_i32, %c0_i32_0 : i32, i32
  }
  func.func @transform_5(%arg0: i32) -> (i32, i32) {
    %c0_i32 = arith.constant 0 : i32
    %c0_i32_0 = arith.constant 0 : i32
    %c0_i32_1 = arith.constant 0 : i32
    return %c0_i32, %c0_i32_0 : i32, i32
  }
  func.func @transform_6(%arg0: i32) -> (i32, i32) {
    %c0_i32 = arith.constant 0 : i32
    %c0_i32_0 = arith.constant 0 : i32
    %c0_i32_1 = arith.constant 0 : i32
    return %c0_i32, %c0_i32_0 : i32, i32
  }
  func.func @transform_7(%arg0: i32) -> (i32, i32) {
    %c0_i32 = arith.constant 0 : i32
    %c0_i32_0 = arith.constant 0 : i32
    return %arg0, %c0_i32 : i32, i32
  }
}

module attributes {stable_mosaic.version = 11 : i64} {
  func.func @_linear_kernel(%arg0: i32, %arg1: memref<16x128xbf16, #tpu.memory_space<vmem>>, %arg2: memref<16x128xbf16, #tpu.memory_space<vmem>>, %arg3: memref<128x128xbf16, #tpu.memory_space<vmem>>, %arg4: memref<128x128xbf16, #tpu.memory_space<vmem>>, %arg5: memref<1x128xf32, #tpu.memory_space<vmem>>, %arg6: memref<16x128xf32, #tpu.memory_space<vmem>>) attributes {dimension_semantics = [#tpu.dimension_semantics<parallel>], iteration_bounds = array<i64: 1>, scalar_prefetch = 0 : i64, scratch_operands = 0 : i64, tpu.core_type = #tpu.core_type<tc>, window_params = [{transform_indices = @transform_0, window_bounds = array<i64: 16, 128>}, {transform_indices = @transform_1, window_bounds = array<i64: 16, 128>}, {pipeline_mode = #tpu.pipeline_mode<synchronous>, transform_indices = @transform_2, window_bounds = array<i64: 128, 128>}, {pipeline_mode = #tpu.pipeline_mode<synchronous>, transform_indices = @transform_3, window_bounds = array<i64: 128, 128>}, {pipeline_mode = #tpu.pipeline_mode<synchronous>, transform_indices = @transform_4, window_bounds = array<i64: 1, 128>}, {transform_indices = @transform_5, window_bounds = array<i64: 16, 128>}]} {
    %c0 = arith.constant 0 : index
    %c0_0 = arith.constant 0 : index
    %0 = vector.load %arg1[%c0, %c0_0] : memref<16x128xbf16, #tpu.memory_space<vmem>>, vector<16x128xbf16>
    %c0_1 = arith.constant 0 : index
    %c0_2 = arith.constant 0 : index
    %1 = vector.load %arg3[%c0_1, %c0_2] : memref<128x128xbf16, #tpu.memory_space<vmem>>, vector<128x128xbf16>
    %cst = arith.constant dense<0.000000e+00> : vector<16x128xf32>
    %2 = tpu.matmul %0, %1, %cst {dimension_numbers = #tpu.dot_dimension_numbers<[1], [0], [0], [1], [0, 0, 1, 1], [], []>} : vector<16x128xbf16>, vector<128x128xbf16>, vector<16x128xf32> -> vector<16x128xf32>
    %c0_3 = arith.constant 0 : index
    %c0_4 = arith.constant 0 : index
    %3 = vector.load %arg2[%c0_3, %c0_4] : memref<16x128xbf16, #tpu.memory_space<vmem>>, vector<16x128xbf16>
    %c0_5 = arith.constant 0 : index
    %c0_6 = arith.constant 0 : index
    %4 = vector.load %arg4[%c0_5, %c0_6] : memref<128x128xbf16, #tpu.memory_space<vmem>>, vector<128x128xbf16>
    %cst_7 = arith.constant dense<0.000000e+00> : vector<16x128xf32>
    %5 = tpu.matmul %3, %4, %cst_7 {dimension_numbers = #tpu.dot_dimension_numbers<[1], [0], [0], [1], [0, 0, 1, 1], [], []>} : vector<16x128xbf16>, vector<128x128xbf16>, vector<16x128xf32> -> vector<16x128xf32>
    %6 = arith.addf %2, %5 : vector<16x128xf32>
    %c0_8 = arith.constant 0 : index
    %c0_9 = arith.constant 0 : index
    %7 = vector.load %arg5[%c0_8, %c0_9] : memref<1x128xf32, #tpu.memory_space<vmem>>, vector<1x128xf32>
    %8 = vector.broadcast %7 : vector<1x128xf32> to vector<16x128xf32>
    %9 = arith.addf %6, %8 : vector<16x128xf32>
    %cst_10 = arith.constant 5.000000e-01 : f32
    %10 = vector.broadcast %cst_10 : f32 to vector<16x128xf32>
    %11 = arith.mulf %10, %9 : vector<16x128xf32>
    %cst_11 = arith.constant 4.471500e-02 : f32
    %12 = vector.broadcast %cst_11 : f32 to vector<16x128xf32>
    %13 = arith.mulf %12, %9 : vector<16x128xf32>
    %14 = arith.mulf %13, %9 : vector<16x128xf32>
    %15 = arith.mulf %14, %9 : vector<16x128xf32>
    %16 = arith.addf %9, %15 : vector<16x128xf32>
    %cst_12 = arith.constant 0.797884583 : f32
    %17 = vector.broadcast %cst_12 : f32 to vector<16x128xf32>
    %18 = arith.mulf %17, %16 : vector<16x128xf32>
    %19 = math.tanh %18 : vector<16x128xf32>
    %cst_13 = arith.constant 1.000000e+00 : f32
    %20 = vector.broadcast %cst_13 : f32 to vector<16x128xf32>
    %21 = arith.addf %20, %19 : vector<16x128xf32>
    %22 = arith.mulf %11, %21 : vector<16x128xf32>
    %c0_14 = arith.constant 0 : index
    %c0_15 = arith.constant 0 : index
    %23 = vector.load %arg6[%c0_14, %c0_15] : memref<16x128xf32, #tpu.memory_space<vmem>>, vector<16x128xf32>
    tpu.vector_store %arg6[%c0_14, %c0_15], %22 {strides = array<i32>} : memref<16x128xf32, #tpu.memory_space<vmem>>, vector<16x128xf32>,
    return
  }
  func.func @transform_0(%arg0: i32) -> (i32, i32) {
    %c0_i32 = arith.constant 0 : i32
    %c0_i32_0 = arith.constant 0 : i32
    return %arg0, %c0_i32 : i32, i32
  }
  func.func @transform_1(%arg0: i32) -> (i32, i32) {
    %c0_i32 = arith.constant 0 : i32
    %c0_i32_0 = arith.constant 0 : i32
    return %arg0, %c0_i32 : i32, i32
  }
  func.func @transform_2(%arg0: i32) -> (i32, i32) {
    %c0_i32 = arith.constant 0 : i32
    %c0_i32_0 = arith.constant 0 : i32
    %c0_i32_1 = arith.constant 0 : i32
    return %c0_i32, %c0_i32_0 : i32, i32
  }
  func.func @transform_3(%arg0: i32) -> (i32, i32) {
    %c0_i32 = arith.constant 0 : i32
    %c0_i32_0 = arith.constant 0 : i32
    %c0_i32_1 = arith.constant 0 : i32
    return %c0_i32, %c0_i32_0 : i32, i32
  }
  func.func @transform_4(%arg0: i32) -> (i32, i32) {
    %c0_i32 = arith.constant 0 : i32
    %c0_i32_0 = arith.constant 0 : i32
    %c0_i32_1 = arith.constant 0 : i32
    return %c0_i32, %c0_i32_0 : i32, i32
  }
  func.func @transform_5(%arg0: i32) -> (i32, i32) {
    %c0_i32 = arith.constant 0 : i32
    %c0_i32_0 = arith.constant 0 : i32
    return %arg0, %c0_i32 : i32, i32
  }
}

</mosaic_0001>

<bundles_post_ra>
// kernel: eq.36
= control target key start
LH: loop header
LB: loop body
LE: loop exit
PB: predicated region body
PF: predicated region fallthrough
CT: control target
= control target key end

     0   :  { %vm7_vm0 = vcmask 64512   ;;  %vm13_vm1 = vcmask 130112   ;;  %s39_s0 = inlined_call_operand.vmem [shape: s32[2,8], index: 0, kind: input, shape index: {}]   ;;  %s40_s1 = inlined_call_operand.vmem [shape: s32[16], index: 1, kind: output, shape index: {}]  }
   0x1   :  { %v4_v0 = vld [vmem:[%s39_s0] sm:$0x3]  ;;  %s22_s0 = smov 8  }
   0x2   :  { %5 = vst [vmem:[#allocation1] sm:$0x3] %v4_v0 }
   0x9   :  { %v10_v1 = vld [vmem:[#allocation1 + $0x1] sm:$0x1]   ;;  %v6_v2 = vld [vmem:[#allocation1] sm:$0x1]  }
   0xa   :  { %11 = vrot.lane.b32.xlu0 %v10_v1, %s22_s0  ;;  %8 = vst.msk [vmem:[#allocation0] sm:$0x1] %vm7_vm0, %v6_v2  }
  0x7c   :  { %v12_v3 = vpop.permute.xlu0 %11  }
  0x7d   :  { %14 = vst.msk [vmem:[#allocation0] sm:$0x1] %vm13_vm1, %v12_v3  }
  0x84   :  { %v18_v4 = vld [vmem:[#allocation0] sm:$0x1] }
  0x85   :  { %20 = vst [vmem:[%s40_s1] sm:$0x1] %v18_v4 }

// kernel: qagnn_forward.14
= control target key start
LH: loop header
LB: loop body
LE: loop exit
PB: predicated region body
PF: predicated region fallthrough
CT: control target
= control target key end

     0   :  { %10 = vsyncpa [#allocation3], 0  ;;  %s552_s0 = inlined_call_operand.vmem [shape: bf16[16,128], index: 0, kind: input, shape index: {}]   ;;  %s553_s1 = inlined_call_operand.vmem [shape: bf16[16,128], index: 1, kind: input, shape index: {}]   ;;  %s554_s2 = inlined_call_operand.hbm [shape: bf16[128,128], index: 2, kind: input, shape index: {}]   ;;  %s555_s3 = inlined_call_operand.hbm [shape: bf16[128,128], index: 3, kind: input, shape index: {}]   ;;  %s556_s4 = inlined_call_operand.vmem [shape: f32[1,128], index: 4, kind: input, shape index: {}]   ;;  %s557_s5 = inlined_call_operand.vmem [shape: bf16[16,128], index: 5, kind: output, shape index: {}]  }
   0x1   :  { %11 = vsyncpa [#allocation5], 0  ;;  %s480_s18 = smov [#allocation2]   ;;  %s432_s22 = scalar_lea.hbm %s554_s2, 1024 }
   0x2   :  { %s21_s19 = sshll.u32 %s480_s18, 4  ;;  %p433_p0 = scmp.ne.s32.totalorder %s554_s2, %s432_s22  ;;  %s22_s19 = int_to_ptr.vmem [resolvable:$true] %s21_s19 }
   0x3   :  { %p436_p1 = scmp.lt.u32.totalorder %s432_s22, %s554_s2 }
   0x5   :  { %p438_p2 = pnand %p436_p1, %p433_p0 }
   0x7   :  { %441 = shalt.err (!%p438_p2)
}
   0x8   :  { %s442_s27 = scalar_lea.vmem %s22_s19, 1024  ;;  %p447_p4 = scmp.lt.s32.totalorder %s22_s19, %s22_s19 }
   0x9   :  { %p443_p3 = scmp.ne.s32.totalorder %s22_s19, %s442_s27  ;;  %p448_p5 = scmp.lt.s32.totalorder %s442_s27, %s442_s27 }
   0xb   :  { %p449_p6 = por %p448_p5, %p447_p4 }
   0xd   :  { %p450_p7 = pnand %p449_p6, %p443_p3 }
   0xf   :  { %453 = shalt.err (!%p450_p7)
}
  0x10   :  { %s481_s28 = smov 64   ;;  %s482_s29 = smov 4  }
  0x11   :  { %27 = dma.hbm_to_vmem [thread:$0]  %s554_s2, 1024, %s22_s19, [#allocation3], %s481_s28, %s481_s28, %s482_s29  }
  0x12   :  { %s483_s7 = smov [#allocation4]   ;;  %s454_s11 = scalar_lea.hbm %s555_s3, 1024 }
  0x13   :  { %s33_s8 = sshll.u32 %s483_s7, 4  ;;  %p455_p8 = scmp.ne.s32.totalorder %s555_s3, %s454_s11  ;;  %s34_s8 = int_to_ptr.vmem [resolvable:$true] %s33_s8 }
  0x14   :  { %p458_p9 = scmp.lt.u32.totalorder %s454_s11, %s555_s3 }
  0x16   :  { %p460_p10 = pnand %p458_p9, %p455_p8 }
  0x18   :  { %463 = shalt.err (!%p460_p10)
}
  0x19   :  { %s464_s16 = scalar_lea.vmem %s34_s8, 1024  ;;  %p469_p12 = scmp.lt.s32.totalorder %s34_s8, %s34_s8 }
  0x1a   :  { %p465_p11 = scmp.ne.s32.totalorder %s34_s8, %s464_s16  ;;  %p470_p13 = scmp.lt.s32.totalorder %s464_s16, %s464_s16 }
  0x1c   :  { %p471_p0 = por %p470_p13, %p469_p12 }
  0x1e   :  { %p472_p1 = pnand %p471_p0, %p465_p11 }
  0x20   :  { %475 = shalt.err (!%p472_p1)
}
  0x21   :  { %39 = dma.hbm_to_vmem [thread:$0]  %s555_s3, 1024, %s34_s8, [#allocation5], %s481_s28, %s481_s28, %s482_s29  }
  0x22   :  { %476 = dma.done.wait [#allocation3], 1024  }
  0x23   :  { %477 = vsyncadd [#allocation3], 4294966272 }
  0x24   :  { %478 = dma.done.wait [#allocation5], 1024  }
  0x25   :  { %479 = vsyncadd [#allocation5], 4294966272  ;;  %v484_v0 = vmov 0.0   ;;  %vm485_vm0 = vmmov 0   ;;  %v410_v1 = vld [vmem:[#allocation4] sm:$0xff]   ;;  %v412_v3 = vld [vmem:[#allocation4 + $0x8] sm:$0xff]  }
  0x26   :  { %364 = vmatprep.subr.bf16.mxu0 %v484_v0  ;;  %384 = vmatprep.subr.bf16.mxu1 %v484_v0  ;;  %v411_v2 = vld [vmem:[#allocation2] sm:$0xff]   ;;  %v413_v4 = vld [vmem:[#allocation2 + $0x8] sm:$0xff]   ;;  %v414_v5 = vld [vmem:[#allocation4 + $0x10] sm:$0xff]  }
  0x27   :  { %380 = vmatprep.mubr.msk.bf16.mxu0 %vm485_vm0, %v484_v0  ;;  %400 = vmatprep.mubr.msk.bf16.mxu1 %vm485_vm0, %v484_v0  ;;  %v415_v6 = vld [vmem:[#allocation2 + $0x10] sm:$0xff]   ;;  %v416_v7 = vld [vmem:[#allocation4 + $0x18] sm:$0xff]   ;;  %v418_v9 = vld [vmem:[#allocation4 + $0x20] sm:$0xff]  }
  0x28   :  { %365 = vmatpush3.bf16.msra.mxu0 %v410_v1  ;;  %385 = vmatpush3.bf16.msra.mxu1 %v411_v2  ;;  %v417_v8 = vld [vmem:[#allocation2 + $0x18] sm:$0xff]   ;;  %v419_v10 = vld [vmem:[#allocation2 + $0x20] sm:$0xff]   ;;  %v420_v11 = vld [vmem:[#allocation4 + $0x28] sm:$0xff]  }
  0x29   :  { %366 = vmatprep.subr.bf16.mxu0 %v484_v0  ;;  %386 = vmatprep.subr.bf16.mxu1 %v484_v0  ;;  %v421_v12 = vld [vmem:[#allocation2 + $0x28] sm:$0xff]   ;;  %v422_v13 = vld [vmem:[#allocation4 + $0x30] sm:$0xff]   ;;  %v424_v15 = vld [vmem:[#allocation4 + $0x38] sm:$0xff]  }
  0x2a   :  { %v423_v14 = vld [vmem:[#allocation2 + $0x30] sm:$0xff]   ;;  %v425_v16 = vld [vmem:[#allocation2 + $0x38] sm:$0xff]   ;;  %v426_v17 = vld [vmem:[%s553_s1] sm:$0xff]  }
  0x2b   :  { %v427_v18 = vld [vmem:[%s552_s0] sm:$0xff]  }
  0x2c   :  { %367 = vmatpush3.bf16.msra.mxu0 %v412_v3  ;;  %387 = vmatpush3.bf16.msra.mxu1 %v413_v4  ;;  %v336_v21 = vld [vmem:[%s556_s4] ss:$0 sm:$0xff] }
  0x2d   :  { %368 = vmatprep.subr.bf16.mxu0 %v484_v0  ;;  %388 = vmatprep.subr.bf16.mxu1 %v484_v0 }
  0x30   :  { %369 = vmatpush3.bf16.msra.mxu0 %v414_v5  ;;  %389 = vmatpush3.bf16.msra.mxu1 %v415_v6 }
  0x31   :  { %370 = vmatprep.subr.bf16.mxu0 %v484_v0  ;;  %390 = vmatprep.subr.bf16.mxu1 %v484_v0 }
  0x34   :  { %371 = vmatpush3.bf16.msra.mxu0 %v416_v7  ;;  %391 = vmatpush3.bf16.msra.mxu1 %v417_v8 }
  0x35   :  { %372 = vmatprep.subr.bf16.mxu0 %v484_v0  ;;  %392 = vmatprep.subr.bf16.mxu1 %v484_v0 }
  0x38   :  { %373 = vmatpush3.bf16.msra.mxu0 %v418_v9  ;;  %393 = vmatpush3.bf16.msra.mxu1 %v419_v10 }
  0x39   :  { %374 = vmatprep.subr.bf16.mxu0 %v484_v0  ;;  %394 = vmatprep.subr.bf16.mxu1 %v484_v0 }
  0x3c   :  { %375 = vmatpush3.bf16.msra.mxu0 %v420_v11  ;;  %395 = vmatpush3.bf16.msra.mxu1 %v421_v12 }
  0x3d   :  { %376 = vmatprep.subr.bf16.mxu0 %v484_v0  ;;  %396 = vmatprep.subr.bf16.mxu1 %v484_v0 }
  0x40   :  { %377 = vmatpush3.bf16.msra.mxu0 %v422_v13  ;;  %397 = vmatpush3.bf16.msra.mxu1 %v423_v14 }
  0x41   :  { %378 = vmatprep.subr.bf16.mxu0 %v484_v0  ;;  %398 = vmatprep.subr.bf16.mxu1 %v484_v0 }
  0x44   :  { %379 = vmatpush3.bf16.msra.mxu0 %v424_v15  ;;  %399 = vmatpush3.bf16.msra.mxu1 %v425_v16 }
  0x47   :  { %381 = vmatmul.mubr.bf16.vlgmr.msra.gmra.mrb[0].mxu0 %v426_v17  ;;  %401 = vmatmul.mubr.bf16.vlgmr.msra.gmra.mrb[0].mxu1 %v427_v18 }
 0x11a   :  { %v173_v19 = vpop.f32.mrb[0].mxu0  ;;  %v268_v20 = vpop.f32.mrb[0].mxu1 }
 0x11b   :  { %v382_v22 = vpop.f32.mrb[1].mxu0  ;;  %v269_v23 = vadd.f32 %v268_v20, %v173_v19  ;;  %v402_v24 = vpop.f32.mrb[1].mxu1 }
 0x11c   :  { %v176_v25 = vpop.f32.mrb[2].mxu0  ;;  %v271_v26 = vpop.f32.mrb[2].mxu1 }
 0x11d   :  { %v383_v27 = vpop.f32.mrb[3].mxu0  ;;  %v282_v28 = vadd.f32 %v336_v21, %v269_v23  ;;  %v272_v29 = vadd.f32 %v271_v26, %v176_v25  ;;  %v403_v30 = vpop.f32.mrb[3].mxu1 }
 0x11f   :  { %v286_v31 = vmul.f32 0.044715, %v282_v28  ;;  %v283_v32 = vadd.f32 %v336_v21, %v272_v29  ;;  %v284_v45 = vmul.f32 0.5, %v282_v28 }
 0x121   :  { %v288_v33 = vmul.f32 %v286_v31, %v282_v28  ;;  %v287_v34 = vmul.f32 0.044715, %v283_v32  ;;  %v285_v46 = vmul.f32 0.5, %v283_v32 }
 0x123   :  { %v290_v35 = vmul.f32 %v288_v33, %v282_v28  ;;  %v289_v36 = vmul.f32 %v287_v34, %v283_v32 }
 0x125   :  { %v292_v37 = vadd.f32 %v290_v35, %v282_v28  ;;  %v291_v38 = vmul.f32 %v289_v36, %v283_v32 }
 0x127   :  { %v294_v39 = vmul.f32 0.7978846, %v292_v37  ;;  %v293_v40 = vadd.f32 %v291_v38, %v283_v32 }
 0x129   :  { %428 = vtanh.f32 %v294_v39  ;;  %v295_v41 = vmul.f32 0.7978846, %v293_v40 }
 0x12b   :  { %430 = vtanh.f32 %v295_v41 }
 0x133   :  { %v429_v42 = vpop.eup %428 }
 0x134   :  { %v298_v43 = vadd.f32 1.0, %v429_v42 }
 0x135   :  { %v431_v44 = vpop.eup %430 }
 0x136   :  { %v299_v47 = vadd.f32 1.0, %v431_v44  ;;  %v300_v48 = vmul.f32 %v298_v43, %v284_v45 }
 0x138   :  { %v301_v49 = vmul.f32 %v299_v47, %v285_v46 }
 0x13a   :  { %v344_v50 = vpack.c.bf16 %v301_v49, %v300_v48 }
 0x13c   :  { %345 = vst [vmem:[%s557_s5] sm:$0xff] %v344_v50  }
 0x13d   :  { %316 = vsyncpa [#allocation3], 1 }
 0x13e   :  { %317 = vsyncpa [#allocation5], 1 }

// kernel: qagnn_forward.17
= control target key start
LH: loop header
LB: loop body
LE: loop exit
PB: predicated region body
PF: predicated region fallthrough
CT: control target
= control target key end

     0   :  { %v765_v0 = vmov 0.0   ;;  %vm766_vm0 = vmmov 0   ;;  %v767_v3 = vmov 0   ;;  %v527_v56 = vlaneseq  ;;  %s985_s3 = inlined_call_operand.vmem [shape: bf16[128,384], index: 3, kind: input, shape index: {}]   ;;  %s986_s1 = inlined_call_operand.vmem [shape: bf16[16,128], index: 1, kind: input, shape index: {}]   ;;  %s987_s2 = inlined_call_operand.vmem [shape: bf16[128,384], index: 2, kind: input, shape index: {}]   ;;  %s988_s0 = inlined_call_operand.vmem [shape: bf16[16,128], index: 0, kind: input, shape index: {}]   ;;  %s989_s4 = inlined_call_operand.vmem [shape: f32[1,384], index: 4, kind: input, shape index: {}]   ;;  %s990_s5 = inlined_call_operand.vmem [shape: bf16[16,384], index: 5, kind: output, shape index: {}]  }
   0x1   :  { %652 = vmatprep.subr.bf16.mxu1 %v765_v0  ;;  %v699_v1 = vld [vmem:[%s985_s3 + $0x4] ss:$12 sps:$4 sm:$0xff]   ;;  %668 = vmatprep.mubr.msk.bf16.mxu1 %vm766_vm0, %v765_v0  ;;  %v701_v2 = vld [vmem:[%s985_s3 + $0x8] ss:$12 sps:$4 sm:$0xff]   ;;  %v702_v4 = vld [vmem:[%s985_s3] ss:$12 sps:$4 sm:$0xff]  }
   0x2   :  { %255 = vmatprep.mubr.bf16.mxu0 %v767_v3  ;;  %223 = vmatprep.subr.bf16.mxu0 %v699_v1  ;;  %v703_v5 = vld [vmem:[%s985_s3 + $0x1c] ss:$12 sps:$4 sm:$0xff]   ;;  %v705_v6 = vld [vmem:[%s985_s3 + $0x20] ss:$12 sps:$4 sm:$0xff]   ;;  %v706_v7 = vld [vmem:[%s985_s3 + $0x18] ss:$12 sps:$4 sm:$0xff]  }
   0x3   :  { %653 = vmatpush3.bf16.msra.mxu1 %v701_v2  ;;  %224 = vmatpush1.bf16.msra.mxu0 %v702_v4  ;;  %v707_v8 = vld [vmem:[%s985_s3 + $0x34] ss:$12 sps:$4 sm:$0xff]   ;;  %v709_v9 = vld [vmem:[%s985_s3 + $0x38] ss:$12 sps:$4 sm:$0xff]   ;;  %v710_v10 = vld [vmem:[%s985_s3 + $0x30] ss:$12 sps:$4 sm:$0xff]  }
   0x4   :  { %654 = vmatprep.subr.bf16.mxu1 %v765_v0  ;;  %225 = vmatprep.subr.bf16.mxu0 %v703_v5  ;;  %v711_v11 = vld [vmem:[%s985_s3 + $0x4c] ss:$12 sps:$4 sm:$0xff]   ;;  %v713_v12 = vld [vmem:[%s985_s3 + $0x50] ss:$12 sps:$4 sm:$0xff]   ;;  %v714_v13 = vld [vmem:[%s985_s3 + $0x48] ss:$12 sps:$4 sm:$0xff]  }
   0x5   :  { %v715_v14 = vld [vmem:[%s985_s3 + $0x64] ss:$12 sps:$4 sm:$0xff]   ;;  %v717_v15 = vld [vmem:[%s985_s3 + $0x68] ss:$12 sps:$4 sm:$0xff]   ;;  %v718_v16 = vld [vmem:[%s985_s3 + $0x60] ss:$12 sps:$4 sm:$0xff]  }
   0x6   :  { %v719_v17 = vld [vmem:[%s985_s3 + $0x7c] ss:$12 sps:$4 sm:$0xff]   ;;  %v721_v18 = vld [vmem:[%s985_s3 + $0x80] ss:$12 sps:$4 sm:$0xff]   ;;  %v722_v19 = vld [vmem:[%s985_s3 + $0x78] ss:$12 sps:$4 sm:$0xff]  }
   0x7   :  { %655 = vmatpush3.bf16.msra.mxu1 %v705_v6  ;;  %226 = vmatpush1.bf16.msra.mxu0 %v706_v7  ;;  %v723_v20 = vld [vmem:[%s985_s3 + $0x94] ss:$12 sps:$4 sm:$0xff]   ;;  %v725_v21 = vld [vmem:[%s985_s3 + $0x98] ss:$12 sps:$4 sm:$0xff]   ;;  %v726_v22 = vld [vmem:[%s985_s3 + $0x90] ss:$12 sps:$4 sm:$0xff]  }
   0x8   :  { %656 = vmatprep.subr.bf16.mxu1 %v765_v0  ;;  %227 = vmatprep.subr.bf16.mxu0 %v707_v8  ;;  %v727_v23 = vld [vmem:[%s985_s3 + $0xac] ss:$12 sps:$4 sm:$0xff]   ;;  %v729_v24 = vld [vmem:[%s985_s3 + $0xb0] ss:$12 sps:$4 sm:$0xff]   ;;  %v730_v25 = vld [vmem:[%s985_s3 + $0xa8] ss:$12 sps:$4 sm:$0xff]  }
   0x9   :  { %v734_v26 = vld [vmem:[%s987_s2 + $0x4] ss:$12 sps:$4 sm:$0xff]   ;;  %v735_v28 = vld [vmem:[%s987_s2 + $0x8] ss:$12 sps:$4 sm:$0xff]   ;;  %v732_v29 = vld [vmem:[%s987_s2] ss:$12 sps:$4 sm:$0xff]  }
   0xa   :  { %v731_v27 = vld [vmem:[%s986_s1] sm:$0xff]   ;;  %v738_v30 = vld [vmem:[%s987_s2 + $0x1c] ss:$12 sps:$4 sm:$0xff]   ;;  %v746_v36 = vld [vmem:[%s987_s2 + $0x4c] ss:$12 sps:$4 sm:$0xff]   ;;  %v528_v57 = vshrl.u32 %v527_v56, 7 }
   0xb   :  { %657 = vmatpush3.bf16.msra.mxu1 %v709_v9  ;;  %228 = vmatpush1.bf16.msra.mxu0 %v710_v10  ;;  %v739_v31 = vld [vmem:[%s987_s2 + $0x20] ss:$12 sps:$4 sm:$0xff]   ;;  %v736_v32 = vld [vmem:[%s987_s2 + $0x18] ss:$12 sps:$4 sm:$0xff]   ;;  %v740_v35 = vld [vmem:[%s987_s2 + $0x30] ss:$12 sps:$4 sm:$0xff]  }
   0xc   :  { %658 = vmatprep.subr.bf16.mxu1 %v765_v0  ;;  %229 = vmatprep.subr.bf16.mxu0 %v711_v11  ;;  %v742_v33 = vld [vmem:[%s987_s2 + $0x34] ss:$12 sps:$4 sm:$0xff]   ;;  %v743_v34 = vld [vmem:[%s987_s2 + $0x38] ss:$12 sps:$4 sm:$0xff]   ;;  %v747_v37 = vld [vmem:[%s987_s2 + $0x50] ss:$12 sps:$4 sm:$0xff]  }
   0xd   :  { %v744_v38 = vld [vmem:[%s987_s2 + $0x48] ss:$12 sps:$4 sm:$0xff]   ;;  %v750_v39 = vld [vmem:[%s987_s2 + $0x64] ss:$12 sps:$4 sm:$0xff]   ;;  %v748_v41 = vld [vmem:[%s987_s2 + $0x60] ss:$12 sps:$4 sm:$0xff]  }
   0xe   :  { %v751_v40 = vld [vmem:[%s987_s2 + $0x68] ss:$12 sps:$4 sm:$0xff]   ;;  %v755_v43 = vld [vmem:[%s987_s2 + $0x80] ss:$12 sps:$4 sm:$0xff]   ;;  %v752_v44 = vld [vmem:[%s987_s2 + $0x78] ss:$12 sps:$4 sm:$0xff]  }
   0xf   :  { %659 = vmatpush3.bf16.msra.mxu1 %v713_v12  ;;  %230 = vmatpush1.bf16.msra.mxu0 %v714_v13  ;;  %v754_v42 = vld [vmem:[%s987_s2 + $0x7c] ss:$12 sps:$4 sm:$0xff]   ;;  %v758_v45 = vld [vmem:[%s987_s2 + $0x94] ss:$12 sps:$4 sm:$0xff]   ;;  %v759_v46 = vld [vmem:[%s987_s2 + $0x98] ss:$12 sps:$4 sm:$0xff]  }
  0x10   :  { %660 = vmatprep.subr.bf16.mxu1 %v765_v0  ;;  %231 = vmatprep.subr.bf16.mxu0 %v715_v14  ;;  %v756_v47 = vld [vmem:[%s987_s2 + $0x90] ss:$12 sps:$4 sm:$0xff]   ;;  %v762_v48 = vld [vmem:[%s987_s2 + $0xac] ss:$12 sps:$4 sm:$0xff]   ;;  %v760_v50 = vld [vmem:[%s987_s2 + $0xa8] ss:$12 sps:$4 sm:$0xff]  }
  0x11   :  { %v763_v49 = vld [vmem:[%s987_s2 + $0xb0] ss:$12 sps:$4 sm:$0xff]   ;;  %v764_v51 = vld [vmem:[%s988_s0] sm:$0xff]   ;;  %v529_v58 = vsub.s32 0, %v528_v57  ;;  %v537_v60 = vsub.s32 2, %v528_v57  ;;  %v533_v61 = vsub.s32 1, %v528_v57 }
  0x12   :  { %v525_v59 = vld [vmem:[%s989_s4] sm:$0x7] }
  0x13   :  { %661 = vmatpush3.bf16.msra.mxu1 %v717_v15  ;;  %232 = vmatpush1.bf16.msra.mxu0 %v718_v16  ;;  %v530_v62 = vrot.slane %v525_v59, %v529_v58  ;;  %v538_v63 = vrot.slane %v525_v59, %v537_v60 }
  0x14   :  { %662 = vmatprep.subr.bf16.mxu1 %v765_v0  ;;  %233 = vmatprep.subr.bf16.mxu0 %v719_v17 }
  0x17   :  { %663 = vmatpush3.bf16.msra.mxu1 %v721_v18  ;;  %234 = vmatpush1.bf16.msra.mxu0 %v722_v19 }
  0x18   :  { %664 = vmatprep.subr.bf16.mxu1 %v765_v0  ;;  %235 = vmatprep.subr.bf16.mxu0 %v723_v20 }
  0x1b   :  { %665 = vmatpush3.bf16.msra.mxu1 %v725_v21  ;;  %236 = vmatpush1.bf16.msra.mxu0 %v726_v22 }
  0x1c   :  { %666 = vmatprep.subr.bf16.mxu1 %v765_v0  ;;  %237 = vmatprep.subr.bf16.mxu0 %v727_v23 }
  0x1f   :  { %667 = vmatpush3.bf16.msra.mxu1 %v729_v24  ;;  %238 = vmatpush1.bf16.msra.mxu0 %v730_v25 }
  0x20   :  { %672 = vmatprep.subr.bf16.mxu1 %v765_v0  ;;  %441 = vmatprep.subr.bf16.mxu0 %v734_v26 }
  0x22   :  { %669 = vmatmul.mubr.bf16.vlgmr.msra.gmra.mrb[0].mxu1 %v731_v27  ;;  %256 = vmatmul.mubr.bf16.vlgmr.msra.gmra.mrb[0].mxu0 %v731_v27 }
  0x23   :  { %673 = vmatpush3.bf16.msra.mxu1 %v735_v28  ;;  %442 = vmatpush1.bf16.msra.mxu0 %v732_v29 }
  0x24   :  { %674 = vmatprep.subr.bf16.mxu1 %v765_v0  ;;  %443 = vmatprep.subr.bf16.mxu0 %v738_v30 }
  0x25   :  { %688 = vmatprep.mubr.msk.bf16.mxu1 %vm766_vm0, %v765_v0  ;;  %473 = vmatprep.mubr.bf16.mxu0 %v767_v3 }
  0x27   :  { %675 = vmatpush3.bf16.msra.mxu1 %v739_v31  ;;  %444 = vmatpush1.bf16.msra.mxu0 %v736_v32 }
  0x28   :  { %676 = vmatprep.subr.bf16.mxu1 %v765_v0  ;;  %445 = vmatprep.subr.bf16.mxu0 %v742_v33 }
  0x2b   :  { %677 = vmatpush3.bf16.msra.mxu1 %v743_v34  ;;  %446 = vmatpush1.bf16.msra.mxu0 %v740_v35 }
  0x2c   :  { %678 = vmatprep.subr.bf16.mxu1 %v765_v0  ;;  %447 = vmatprep.subr.bf16.mxu0 %v746_v36 }
  0x2f   :  { %679 = vmatpush3.bf16.msra.mxu1 %v747_v37  ;;  %448 = vmatpush1.bf16.msra.mxu0 %v744_v38 }
  0x30   :  { %680 = vmatprep.subr.bf16.mxu1 %v765_v0  ;;  %449 = vmatprep.subr.bf16.mxu0 %v750_v39 }
  0x33   :  { %681 = vmatpush3.bf16.msra.mxu1 %v751_v40  ;;  %450 = vmatpush1.bf16.msra.mxu0 %v748_v41 }
  0x34   :  { %682 = vmatprep.subr.bf16.mxu1 %v765_v0  ;;  %451 = vmatprep.subr.bf16.mxu0 %v754_v42 }
  0x37   :  { %683 = vmatpush3.bf16.msra.mxu1 %v755_v43  ;;  %452 = vmatpush1.bf16.msra.mxu0 %v752_v44 }
  0x38   :  { %684 = vmatprep.subr.bf16.mxu1 %v765_v0  ;;  %453 = vmatprep.subr.bf16.mxu0 %v758_v45 }
  0x3b   :  { %685 = vmatpush3.bf16.msra.mxu1 %v759_v46  ;;  %454 = vmatpush1.bf16.msra.mxu0 %v756_v47 }
  0x3c   :  { %686 = vmatprep.subr.bf16.mxu1 %v765_v0  ;;  %455 = vmatprep.subr.bf16.mxu0 %v762_v48  ;;  %v534_v0 = vrot.slane %v525_v59, %v533_v61 }
  0x3f   :  { %687 = vmatpush3.bf16.msra.mxu1 %v763_v49  ;;  %456 = vmatpush1.bf16.msra.mxu0 %v760_v50 }
  0x42   :  { %689 = vmatmul.mubr.bf16.vlgmr.msra.gmra.mrb[4].mxu1 %v764_v51  ;;  %474 = vmatmul.mubr.bf16.vlgmr.msra.gmra.mrb[0].mxu0 %v764_v51 }
  0xf5   :  { %v300_v52 = vpop.f32.mrb[0].mxu1 }
  0xf6   :  { %v670_v53 = vpop.f32.mrb[1].mxu1 }
  0xf7   :  { %v303_v54 = vpop.f32.mrb[2].mxu1 }
  0xf8   :  { %v671_v55 = vpop.f32.mrb[3].mxu1 }
 0x115   :  { %v518_v1 = vpop.f32.mrb[4].mxu1  ;;  %v475_v3 = vpop.f32.mrb[0].mxu0 }
 0x116   :  { %v519_v2 = vadd.f32 %v518_v1, %v300_v52  ;;  %v690_v4 = vpop.f32.mrb[5].mxu1  ;;  %v542_v5 = vadd.f32 %v530_v62, %v475_v3  ;;  %v477_v6 = vpop.f32.mrb[1].mxu0 }
 0x117   :  { %v521_v7 = vpop.f32.mrb[6].mxu1  ;;  %v543_v9 = vadd.f32 %v534_v0, %v477_v6  ;;  %v479_v11 = vpop.f32.mrb[2].mxu0 }
 0x118   :  { %v544_v8 = vadd.f32 %v538_v63, %v519_v2  ;;  %v522_v10 = vadd.f32 %v521_v7, %v303_v54  ;;  %v691_v12 = vpop.f32.mrb[7].mxu1  ;;  %v545_v13 = vadd.f32 %v530_v62, %v479_v11  ;;  %v481_v14 = vpop.f32.mrb[3].mxu0 }
 0x119   :  { %v630_v16 = vpack.c.bf16 %v543_v9, %v542_v5  ;;  %v546_v18 = vadd.f32 %v534_v0, %v481_v14 }
 0x11a   :  { %v631_v15 = vpack.c.bf16 %v544_v8, %v544_v8  ;;  %v547_v17 = vadd.f32 %v538_v63, %v522_v10 }
 0x11b   :  { %568 = vst [vmem:[%s990_s5] sm:$0xff] %v630_v16  ;;  %v632_v20 = vpack.c.bf16 %v546_v18, %v545_v13 }
 0x11c   :  { %569 = vst [vmem:[%s990_s5 + $0x8] sm:$0xf] %v631_v15  ;;  %v633_v19 = vpack.c.bf16 %v547_v17, %v547_v17 }
 0x11d   :  { %570 = vst [vmem:[%s990_s5 + $0xc] sm:$0xff] %v632_v20 }
 0x11e   :  { %571 = vst [vmem:[%s990_s5 + $0x14] sm:$0xf] %v633_v19 }

// kernel: qagnn_forward.16
= control target key start
LH: loop header
LB: loop body
LE: loop exit
PB: predicated region body
PF: predicated region fallthrough
CT: control target
= control target key end

     0   :  { %s469_s12 = smov 0   ;;  %s516_s0 = inlined_call_operand.vmem [shape: bf16[32,128], index: 0, kind: input, shape index: {}]   ;;  %s517_s1 = inlined_call_operand.vmem [shape: bf16[128,128], index: 1, kind: input, shape index: {}]   ;;  %s518_s2 = inlined_call_operand.vmem [shape: f32[1,128], index: 2, kind: input, shape index: {}]   ;;  %s519_s3 = inlined_call_operand.vmem [shape: bf16[32,128], index: 3, kind: output, shape index: {}]  }
   0x1 LB: > { %s361_s13 = sadd.s32 4294967295, %s445_s12   ;;  %p365_p0 = scmp.ge.s32.totalorder %s445_s12, 1  ;;  %s445_s12 = sphi %s469_s12, %s13_s12  }
   0x2   : > { %p138_p1 = scmp.lt.s32.totalorder %s445_s12, 3 }
   0x4   : > { %p139_p2 = pnand %p365_p0, %p138_p1 }
   0x5   : > { %v430_v0 = vld [vmem:[%s517_s1] sm:$0xff] (!%p139_p2)   ;;  %v447_v1 = vmov (!%p139_p2), 0.0   ;;  %v431_v2 = vld [vmem:[%s517_s1 + $0x8] sm:$0xff] (!%p139_p2)   ;;  %vm448_vm0 = vmmov (!%p139_p2), 0   ;;  %s366_s18 = sshll.u32 (!%p139_p2), %s361_s13, 1  ;;  %v432_v3 = vld [vmem:[%s517_s1 + $0x10] sm:$0xff] (!%p139_p2)  }
   0x6   : > { %142 = sbr.rel (%p139_p2) target bundleno = 257 (0x101), region = 32  ;;  %400 = vmatprep.subr.bf16.mxu0 (!%p139_p2), %v447_v1  ;;  %416 = vmatprep.mubr.msk.bf16.mxu0 (!%p139_p2), %vm448_vm0, %v447_v1  ;;  %p163_p3 = scmp.lt.s32.totalorder (!%p139_p2), %s366_s18, 3  ;;  %v433_v4 = vld [vmem:[%s517_s1 + $0x18] sm:$0xff] (!%p139_p2)   ;;  %v434_v5 = vld [vmem:[%s517_s1 + $0x20] sm:$0xff] (!%p139_p2)   ;;  %v435_v6 = vld [vmem:[%s517_s1 + $0x28] sm:$0xff] (!%p139_p2)  }
   0x7   : > { %401 = vmatpush3.bf16.msra.mxu0 (!%p139_p2), %v430_v0  ;;  %v436_v7 = vld [vmem:[%s517_s1 + $0x30] sm:$0xff] (!%p139_p2)   ;;  %v437_v8 = vld [vmem:[%s517_s1 + $0x38] sm:$0xff] (!%p139_p2)   ;;  %v370_v10 = vld [vmem:[%s518_s2] ss:$0 sm:$0xff] (!%p139_p2) }
   0x8   : > { %402 = vmatprep.subr.bf16.mxu0 (!%p139_p2), %v447_v1 }
   0xb   : > { %403 = vmatpush3.bf16.msra.mxu0 (!%p139_p2), %v431_v2 }
   0xc   : > { %404 = vmatprep.subr.bf16.mxu0 (!%p139_p2), %v447_v1 }
   0xd   : > { %s521_s18 = smov (!%p163_p3, %s366_s18), 3 }
   0xe   : > { %s367_s21 = sshll.u32 %s521_s18, 2 }
   0xf   : > { %s166_s24 = scalar_lea.vmem %s516_s0, %s367_s21  ;;  %405 = vmatpush3.bf16.msra.mxu0 %v432_v3  ;;  %s172_s13 = scalar_lea.vmem %s519_s3, %s367_s21 }
  0x10   : > { %406 = vmatprep.subr.bf16.mxu0 %v447_v1  ;;  %v438_v9 = vld [vmem:[%s166_s24] sm:$0xff]  }
  0x13   : > { %407 = vmatpush3.bf16.msra.mxu0 %v433_v4 }
  0x14   : > { %408 = vmatprep.subr.bf16.mxu0 %v447_v1 }
  0x17   : > { %409 = vmatpush3.bf16.msra.mxu0 %v434_v5 }
  0x18   : > { %410 = vmatprep.subr.bf16.mxu0 %v447_v1 }
  0x1b   : > { %411 = vmatpush3.bf16.msra.mxu0 %v435_v6 }
  0x1c   : > { %412 = vmatprep.subr.bf16.mxu0 %v447_v1 }
  0x1f   : > { %413 = vmatpush3.bf16.msra.mxu0 %v436_v7 }
  0x20   : > { %414 = vmatprep.subr.bf16.mxu0 %v447_v1 }
  0x23   : > { %415 = vmatpush3.bf16.msra.mxu0 %v437_v8 }
  0x26   : > { %417 = vmatmul.mubr.bf16.vlgmr.msra.gmra.mrb[0].mxu0 %v438_v9 }
  0xf9   : > { %v288_v11 = vpop.f32.mrb[0].mxu0 }
  0xfa   : > { %v418_v12 = vpop.f32.mrb[1].mxu0  ;;  %v289_v14 = vadd.f32 %v370_v10, %v288_v11 }
  0xfb   : > { %v291_v13 = vpop.f32.mrb[2].mxu0 }
  0xfc   : > { %v292_v15 = vadd.f32 %v370_v10, %v291_v13  ;;  %v419_v16 = vpop.f32.mrb[3].mxu0 }
  0xfe   : > { %v389_v17 = vpack.c.bf16 %v292_v15, %v289_v14 }
 0x100   : > { %390 = vst [vmem:[%s172_s13] sm:$0xff] %v389_v17  }
 0x101 PF: > { %s13_s12 = sadd.s32 1, %s445_s12  }
 0x102   : > { %p10_p4 = scmp.ge.s32.totalorder %s13_s12, 4  }
 0x104   :  { %12 = sbr.rel (!%p10_p4) target bundleno = 1 (0x1), region = 62 }

// kernel: qagnn_forward.18
= control target key start
LH: loop header
LB: loop body
LE: loop exit
PB: predicated region body
PF: predicated region fallthrough
CT: control target
= control target key end

     0   :  { %s461_s9 = smov 0   ;;  %s530_s0 = inlined_call_operand.vmem [shape: bf16[32,128], index: 0, kind: input, shape index: {}]   ;;  %s531_s1 = inlined_call_operand.vmem [shape: bf16[128,256], index: 1, kind: input, shape index: {}]   ;;  %s532_s2 = inlined_call_operand.vmem [shape: bf16[32,256], index: 2, kind: output, shape index: {}]  }
   0x1 LB: > { %s369_s10 = sadd.s32 4294967295, %s443_s9   ;;  %p373_p0 = scmp.ge.s32.totalorder %s443_s9, 1  ;;  %s443_s9 = sphi %s461_s9, %s12_s9  }
   0x2   : > { %p113_p1 = scmp.lt.s32.totalorder %s443_s9, 3 }
   0x4   : > { %p114_p2 = pnand %p373_p0, %p113_p1 }
   0x5   : > { %v412_v0 = vld [vmem:[%s531_s1 + $0x4] ss:$8 sps:$4 sm:$0xff] (!%p114_p2)   ;;  %s374_s13 = sshll.u32 (!%p114_p2), %s369_s10, 1  ;;  %v414_v1 = vld [vmem:[%s531_s1] ss:$8 sps:$4 sm:$0xff] (!%p114_p2)   ;;  %v445_v2 = vmov (!%p114_p2), 0  }
   0x6   : > { %117 = sbr.rel (%p114_p2) target bundleno = 256 (0x100), region = 28  ;;  %286 = vmatprep.mubr.bf16.mxu0 (!%p114_p2), %v445_v2  ;;  %p137_p3 = scmp.lt.s32.totalorder (!%p114_p2), %s374_s13, 3  ;;  %254 = vmatprep.subr.bf16.mxu0 (!%p114_p2), %v412_v0  ;;  %v415_v3 = vld [vmem:[%s531_s1 + $0x14] ss:$8 sps:$4 sm:$0xff] (!%p114_p2)   ;;  %v417_v4 = vld [vmem:[%s531_s1 + $0x10] ss:$8 sps:$4 sm:$0xff] (!%p114_p2)  }
   0x7   : > { %255 = vmatpush1.bf16.msra.mxu0 (!%p114_p2), %v414_v1  ;;  %v418_v5 = vld [vmem:[%s531_s1 + $0x24] ss:$8 sps:$4 sm:$0xff] (!%p114_p2)   ;;  %v420_v6 = vld [vmem:[%s531_s1 + $0x20] ss:$8 sps:$4 sm:$0xff] (!%p114_p2)   ;;  %v421_v7 = vld [vmem:[%s531_s1 + $0x34] ss:$8 sps:$4 sm:$0xff] (!%p114_p2)  }
   0x8   : > { %256 = vmatprep.subr.bf16.mxu0 (!%p114_p2), %v415_v3  ;;  %v423_v8 = vld [vmem:[%s531_s1 + $0x30] ss:$8 sps:$4 sm:$0xff] (!%p114_p2)   ;;  %v424_v9 = vld [vmem:[%s531_s1 + $0x44] ss:$8 sps:$4 sm:$0xff] (!%p114_p2)   ;;  %v426_v10 = vld [vmem:[%s531_s1 + $0x40] ss:$8 sps:$4 sm:$0xff] (!%p114_p2)  }
   0x9   : > { %v427_v11 = vld [vmem:[%s531_s1 + $0x54] ss:$8 sps:$4 sm:$0xff] (!%p114_p2)   ;;  %v429_v12 = vld [vmem:[%s531_s1 + $0x50] ss:$8 sps:$4 sm:$0xff] (!%p114_p2)   ;;  %v430_v13 = vld [vmem:[%s531_s1 + $0x64] ss:$8 sps:$4 sm:$0xff] (!%p114_p2)  }
   0xa   : > { %v432_v14 = vld [vmem:[%s531_s1 + $0x60] ss:$8 sps:$4 sm:$0xff] (!%p114_p2)   ;;  %v433_v15 = vld [vmem:[%s531_s1 + $0x74] ss:$8 sps:$4 sm:$0xff] (!%p114_p2)   ;;  %v435_v16 = vld [vmem:[%s531_s1 + $0x70] ss:$8 sps:$4 sm:$0xff] (!%p114_p2)  }
   0xb   : > { %257 = vmatpush1.bf16.msra.mxu0 (!%p114_p2), %v417_v4 }
   0xc   : > { %258 = vmatprep.subr.bf16.mxu0 (!%p114_p2), %v418_v5 }
   0xd   : > { %s534_s13 = smov (!%p137_p3, %s374_s13), 3 }
   0xe   : > { %s375_s22 = sshll.u32 %s534_s13, 2 }
   0xf   : > { %s140_s29 = scalar_lea.vmem %s530_s0, %s375_s22  ;;  %259 = vmatpush1.bf16.msra.mxu0 %v420_v6  ;;  %s400_s22 = sshll.u32 %s534_s13, 3 }
  0x10   : > { %260 = vmatprep.subr.bf16.mxu0 %v421_v7  ;;  %v436_v17 = vld [vmem:[%s140_s29] sm:$0xff]   ;;  %s147_s25 = scalar_lea.vmem %s532_s2, %s400_s22 }
  0x13   : > { %261 = vmatpush1.bf16.msra.mxu0 %v423_v8 }
  0x14   : > { %262 = vmatprep.subr.bf16.mxu0 %v424_v9 }
  0x17   : > { %263 = vmatpush1.bf16.msra.mxu0 %v426_v10 }
  0x18   : > { %264 = vmatprep.subr.bf16.mxu0 %v427_v11 }
  0x1b   : > { %265 = vmatpush1.bf16.msra.mxu0 %v429_v12 }
  0x1c   : > { %266 = vmatprep.subr.bf16.mxu0 %v430_v13 }
  0x1f   : > { %267 = vmatpush1.bf16.msra.mxu0 %v432_v14 }
  0x20   : > { %268 = vmatprep.subr.bf16.mxu0 %v433_v15 }
  0x23   : > { %269 = vmatpush1.bf16.msra.mxu0 %v435_v16 }
  0x26   : > { %287 = vmatmul.mubr.bf16.vlgmr.msra.gmra.mrb[0].mxu0 %v436_v17 }
  0xf9   : > { %v288_v18 = vpop.f32.mrb[0].mxu0 }
  0xfa   : > { %v290_v19 = vpop.f32.mrb[1].mxu0 }
  0xfb   : > { %v401_v20 = vpack.c.bf16 %v290_v19, %v288_v18  ;;  %v292_v21 = vpop.f32.mrb[2].mxu0 }
  0xfc   : > { %v294_v22 = vpop.f32.mrb[3].mxu0 }
  0xfd   : > { %309 = vst [vmem:[%s147_s25] sm:$0xff] %v401_v20  ;;  %v402_v23 = vpack.c.bf16 %v294_v22, %v292_v21 }
  0xff   : > { %310 = vst [vmem:[%s147_s25 + $0x8] sm:$0xff] %v402_v23 }
 0x100 PF: > { %s12_s9 = sadd.s32 1, %s443_s9  }
 0x101   : > { %p9_p4 = scmp.ge.s32.totalorder %s12_s9, 4  }
 0x103   :  { %11 = sbr.rel (!%p9_p4) target bundleno = 1 (0x1), region = 58 }

// kernel: qagnn_forward.15
= control target key start
LH: loop header
LB: loop body
LE: loop exit
PB: predicated region body
PF: predicated region fallthrough
CT: control target
= control target key end

     0   :  { %s555_s18 = smov 0   ;;  %s612_s0 = inlined_call_operand.vmem [shape: bf16[32,128], index: 0, kind: input, shape index: {}]   ;;  %s613_s1 = inlined_call_operand.vmem [shape: bf16[128,128], index: 1, kind: input, shape index: {}]   ;;  %s614_s2 = inlined_call_operand.vmem [shape: f32[1,128], index: 2, kind: input, shape index: {}]   ;;  %s615_s3 = inlined_call_operand.vmem [shape: f32[1,128], index: 3, kind: input, shape index: {}]   ;;  %s616_s4 = inlined_call_operand.vmem [shape: f32[1,128], index: 4, kind: input, shape index: {}]   ;;  %s617_s5 = inlined_call_operand.vmem [shape: bf16[32,128], index: 5, kind: output, shape index: {}]  }
   0x1 LB: > { %s435_s19 = sadd.s32 4294967295, %s521_s18   ;;  %p439_p0 = scmp.ge.s32.totalorder %s521_s18, 1  ;;  %s521_s18 = sphi %s555_s18, %s15_s18  }
   0x2   : > { %p188_p1 = scmp.lt.s32.totalorder %s521_s18, 3 }
   0x4   : > { %p189_p2 = pnand %p439_p0, %p188_p1 }
   0x5   : > { %v506_v0 = vld [vmem:[%s613_s1] sm:$0xff] (!%p189_p2)   ;;  %v523_v1 = vmov (!%p189_p2), 0.0   ;;  %v507_v2 = vld [vmem:[%s613_s1 + $0x8] sm:$0xff] (!%p189_p2)   ;;  %vm524_vm0 = vmmov (!%p189_p2), 0   ;;  %s440_s24 = sshll.u32 (!%p189_p2), %s435_s19, 1  ;;  %v508_v3 = vld [vmem:[%s613_s1 + $0x10] sm:$0xff] (!%p189_p2)  }
   0x6   : > { %192 = sbr.rel (%p189_p2) target bundleno = 263 (0x107), region = 40  ;;  %476 = vmatprep.subr.bf16.mxu0 (!%p189_p2), %v523_v1  ;;  %492 = vmatprep.mubr.msk.bf16.mxu0 (!%p189_p2), %vm524_vm0, %v523_v1  ;;  %p217_p3 = scmp.lt.s32.totalorder (!%p189_p2), %s440_s24, 3  ;;  %v509_v4 = vld [vmem:[%s613_s1 + $0x18] sm:$0xff] (!%p189_p2)   ;;  %v510_v5 = vld [vmem:[%s613_s1 + $0x20] sm:$0xff] (!%p189_p2)   ;;  %v511_v6 = vld [vmem:[%s613_s1 + $0x28] sm:$0xff] (!%p189_p2)  }
   0x7   : > { %477 = vmatpush3.bf16.msra.mxu0 (!%p189_p2), %v506_v0  ;;  %v512_v7 = vld [vmem:[%s613_s1 + $0x30] sm:$0xff] (!%p189_p2)   ;;  %v513_v8 = vld [vmem:[%s613_s1 + $0x38] sm:$0xff] (!%p189_p2)   ;;  %v444_v10 = vld [vmem:[%s614_s2] ss:$0 sm:$0xff] (!%p189_p2) }
   0x8   : > { %478 = vmatprep.subr.bf16.mxu0 (!%p189_p2), %v523_v1  ;;  %v454_v12 = vld [vmem:[%s615_s3] ss:$0 sm:$0xff] (!%p189_p2) }
   0x9   : > { %v455_v15 = vld [vmem:[%s616_s4] ss:$0 sm:$0xff] (!%p189_p2) }
   0xb   : > { %479 = vmatpush3.bf16.msra.mxu0 (!%p189_p2), %v507_v2 }
   0xc   : > { %480 = vmatprep.subr.bf16.mxu0 (!%p189_p2), %v523_v1 }
   0xd   : > { %s619_s24 = smov (!%p217_p3, %s440_s24), 3 }
   0xe   : > { %s441_s27 = sshll.u32 %s619_s24, 2 }
   0xf   : > { %s220_s30 = scalar_lea.vmem %s612_s0, %s441_s27  ;;  %481 = vmatpush3.bf16.msra.mxu0 %v508_v3  ;;  %s226_s26 = scalar_lea.vmem %s617_s5, %s441_s27 }
  0x10   : > { %482 = vmatprep.subr.bf16.mxu0 %v523_v1  ;;  %v514_v9 = vld [vmem:[%s220_s30] sm:$0xff]  }
  0x13   : > { %483 = vmatpush3.bf16.msra.mxu0 %v509_v4 }
  0x14   : > { %484 = vmatprep.subr.bf16.mxu0 %v523_v1 }
  0x17   : > { %485 = vmatpush3.bf16.msra.mxu0 %v510_v5 }
  0x18   : > { %486 = vmatprep.subr.bf16.mxu0 %v523_v1 }
  0x1b   : > { %487 = vmatpush3.bf16.msra.mxu0 %v511_v6 }
  0x1c   : > { %488 = vmatprep.subr.bf16.mxu0 %v523_v1 }
  0x1f   : > { %489 = vmatpush3.bf16.msra.mxu0 %v512_v7 }
  0x20   : > { %490 = vmatprep.subr.bf16.mxu0 %v523_v1 }
  0x23   : > { %491 = vmatpush3.bf16.msra.mxu0 %v513_v8 }
  0x26   : > { %493 = vmatmul.mubr.bf16.vlgmr.msra.gmra.mrb[0].mxu0 %v514_v9 }
  0xf9   : > { %v342_v11 = vpop.f32.mrb[0].mxu0 }
  0xfa   : > { %v343_v13 = vadd.f32 %v444_v10, %v342_v11  ;;  %v494_v14 = vpop.f32.mrb[1].mxu0 }
  0xfb   : > { %v345_v16 = vpop.f32.mrb[2].mxu0 }
  0xfc   : > { %v356_v17 = vmul.f32 %v454_v12, %v343_v13  ;;  %v346_v18 = vadd.f32 %v444_v10, %v345_v16  ;;  %v495_v19 = vpop.f32.mrb[3].mxu0 }
  0xfe   : > { %v365_v20 = vadd.f32 %v455_v15, %v356_v17  ;;  %v357_v21 = vmul.f32 %v454_v12, %v346_v18 }
 0x100   : > { %v366_v22 = vadd.f32 %v455_v15, %v357_v21  ;;  %v367_v23 = vmax.f32 %v365_v20, 0.0 }
 0x102   : > { %v368_v24 = vmax.f32 %v366_v22, 0.0 }
 0x104   : > { %v465_v25 = vpack.c.bf16 %v368_v24, %v367_v23 }
 0x106   : > { %466 = vst [vmem:[%s226_s26] sm:$0xff] %v465_v25  }
 0x107 PF: > { %s15_s18 = sadd.s32 1, %s521_s18  }
 0x108   : > { %p12_p4 = scmp.ge.s32.totalorder %s15_s18, 4  }
 0x10a   :  { %14 = sbr.rel (!%p12_p4) target bundleno = 1 (0x1), region = 70 }

// kernel: qagnn_forward.19
= control target key start
LH: loop header
LB: loop body
LE: loop exit
PB: predicated region body
PF: predicated region fallthrough
CT: control target
= control target key end

     0   :  { %s656_s15 = smov 0   ;;  %s658_s16 = smov 0   ;;  %s742_s0 = inlined_call_operand.vmem [shape: bf16[32,128], index: 0, kind: input, shape index: {}]   ;;  %s743_s1 = inlined_call_operand.vmem [shape: bf16[32,128], index: 1, kind: input, shape index: {}]   ;;  %s744_s2 = inlined_call_operand.vmem [shape: bf16[32,256], index: 2, kind: input, shape index: {}]   ;;  %s745_s3 = inlined_call_operand.vmem [shape: bf16[128,128], index: 3, kind: input, shape index: {}]   ;;  %s746_s4 = inlined_call_operand.vmem [shape: f32[32,128], index: 4, kind: output, shape index: {}]  }
   0x1   :  { %s660_s17 = smov 0  }
   0x2 LB: > { %s502_s18 = sadd.s32 4294967295, %s627_s17   ;;  %s673_s19 = sadd.s32 1, %s627_s17   ;;  %s627_s17 = sphi %s660_s17, %s749_s17   ;;  %s623_s16 = sphi %s658_s16, %s748_s16   ;;  %s619_s15 = sphi %s656_s15, %s747_s15  }
   0x3   : > { %s70_s20 = ssub.s32 %s627_s17, %s673_s19  ;;  %s73_s21 = sadd.s32 1, %s623_s16 }
   0x4   : > { %p71_p0 = scmp.eq.s32.totalorder %s70_s20, 0  ;;  %p80_p1 = scmp.ne.s32.totalorder %s623_s16, %s619_s15 }
   0x5   : > { %p81_p2 = scmp.eq.s32.totalorder %s627_s17, 0  ;;  %p505_p4 = scmp.ge.s32.totalorder %s627_s17, 2 }
   0x6   : > { %s682_s22 = scalar_select %p71_p0, %s623_s16, %s73_s21  }
   0x7   : > { %p82_p3 = por %p81_p2, %p80_p1  ;;  %156 = sbr.rel (%p505_p4) target bundleno = 21 (0x15), region = 20 }
   0xe   : > { %177 = sbr.rel (!%p82_p3) target bundleno = 21 (0x15), region = 32  ;;  %s179_s23 = sand.u32 (%p82_p3), 1, %s623_s16  }
   0xf   : > { %s529_s24 = sshll.u32 (%p82_p3), %s627_s17, 4  ;;  %s506_s25 = sshll.u32 (%p82_p3), %s179_s23, 3 }
  0x10   : > { %s185_s28 = scalar_lea.vmem (%p82_p3), %s744_s2, %s529_s24  ;;  %s181_s29 = scalar_lea.vmem (%p82_p3), [#allocation2], %s506_s25 }
  0x11   : > { %v201_v0 = vld [vmem:[%s185_s28] sm:$0xf] (%p82_p3)  ;;  %v203_v1 = vld [vmem:[%s185_s28 + $0x8] sm:$0xf] (%p82_p3) }
  0x12   : > { %202 = vst [vmem:[%s181_s29] sm:$0xf] (%p82_p3), %v201_v0  ;;  %204 = vst [vmem:[%s181_s29 + $0x4] sm:$0xf] (%p82_p3), %v203_v1 }
  0x15 PF: > { %p510_p5 = scmp.ge.s32.totalorder %s627_s17, 1  ;;  %p230_p6 = scmp.lt.s32.totalorder %s627_s17, 3 }
  0x17   : > { %p231_p7 = pnand %p510_p5, %p230_p6 }
  0x18   : > { %v597_v2 = vld [vmem:[%s745_s3] sm:$0xff] (!%p231_p7)   ;;  %v629_v3 = vmov (!%p231_p7), 0.0   ;;  %v598_v4 = vld [vmem:[%s745_s3 + $0x8] sm:$0xff] (!%p231_p7)   ;;  %vm630_vm0 = vmmov (!%p231_p7), 0   ;;  %s237_s8 = sand.u32 (!%p231_p7), 1, %s619_s15   ;;  %s512_s9 = sshll.u32 (!%p231_p7), %s502_s18, 1 }
  0x19   : > { %234 = sbr.rel (%p231_p7) target bundleno = 272 (0x110), region = 73  ;;  %551 = vmatprep.subr.bf16.mxu0 (!%p231_p7), %v629_v3  ;;  %567 = vmatprep.mubr.msk.bf16.mxu0 (!%p231_p7), %vm630_vm0, %v629_v3  ;;  %v599_v5 = vld [vmem:[%s745_s3 + $0x10] sm:$0xff] (!%p231_p7)   ;;  %p273_p8 = scmp.lt.s32.totalorder (!%p231_p7), %s512_s9, 3  ;;  %v600_v6 = vld [vmem:[%s745_s3 + $0x18] sm:$0xff] (!%p231_p7)   ;;  %v601_v7 = vld [vmem:[%s745_s3 + $0x20] sm:$0xff] (!%p231_p7)  }
  0x1a   : > { %552 = vmatpush3.bf16.msra.mxu0 (!%p231_p7), %v597_v2  ;;  %s511_s12 = sshll.u32 (!%p231_p7), %s237_s8, 3  ;;  %v602_v14 = vld [vmem:[%s745_s3 + $0x28] sm:$0xff] (!%p231_p7)   ;;  %v603_v20 = vld [vmem:[%s745_s3 + $0x30] sm:$0xff] (!%p231_p7)   ;;  %v604_v23 = vld [vmem:[%s745_s3 + $0x38] sm:$0xff] (!%p231_p7)  }
  0x1b   : > { %553 = vmatprep.subr.bf16.mxu0 (!%p231_p7), %v629_v3  ;;  %s239_s24 = scalar_lea.vmem (!%p231_p7), [#allocation2], %s511_s12 }
  0x1c   : > { %v539_v9 = vld [vmem:[%s239_s24] sm:$0xff] (!%p231_p7)  }
  0x1d   : > { %v540_v12 = vunpack.c.l.bf16 (!%p231_p7), %v539_v9  ;;  %v541_v13 = vunpack.c.h.bf16 (!%p231_p7), %v539_v9 }
  0x1e   : > { %554 = vmatpush3.bf16.msra.mxu0 (!%p231_p7), %v598_v4 }
  0x1f   : > { %555 = vmatprep.subr.bf16.mxu0 (!%p231_p7), %v629_v3 }
  0x20   : > { %s751_s9 = smov (!%p273_p8, %s512_s9), 3 }
  0x21   : > { %s513_s20 = sshll.u32 %s751_s9, 2  ;;  %s517_s8 = sshll.u32 %s751_s9, 3 }
  0x22   : > { %556 = vmatpush3.bf16.msra.mxu0 %v599_v5  ;;  %s282_s18 = scalar_lea.vmem %s743_s1, %s513_s20  ;;  %s276_s27 = scalar_lea.vmem %s742_s0, %s513_s20 }
  0x23   : > { %557 = vmatprep.subr.bf16.mxu0 %v629_v3  ;;  %v535_v8 = vld [vmem:[%s282_s18] sm:$0xff]   ;;  %s289_s12 = scalar_lea.vmem %s746_s4, %s517_s8 }
  0x24   : > { %v536_v10 = vunpack.c.l.bf16 %v535_v8  ;;  %v537_v11 = vunpack.c.h.bf16 %v535_v8  ;;  %v531_v15 = vld [vmem:[%s276_s27] sm:$0xff]  }
  0x25   : > { %v532_v16 = vunpack.c.l.bf16 %v531_v15  ;;  %v533_v17 = vunpack.c.h.bf16 %v531_v15 }
  0x26   : > { %558 = vmatpush3.bf16.msra.mxu0 %v600_v6  ;;  %v304_v18 = vadd.f32 %v540_v12, %v536_v10  ;;  %v305_v19 = vadd.f32 %v541_v13, %v537_v11 }
  0x27   : > { %559 = vmatprep.subr.bf16.mxu0 %v629_v3 }
  0x28   : > { %v306_v21 = vmul.f32 %v532_v16, %v304_v18  ;;  %v307_v22 = vmul.f32 %v533_v17, %v305_v19 }
  0x2a   : > { %560 = vmatpush3.bf16.msra.mxu0 %v601_v7  ;;  %v308_v24 = vpack.c.bf16 %v307_v22, %v306_v21 }
  0x2b   : > { %561 = vmatprep.subr.bf16.mxu0 %v629_v3 }
  0x2e   : > { %562 = vmatpush3.bf16.msra.mxu0 %v602_v14 }
  0x2f   : > { %563 = vmatprep.subr.bf16.mxu0 %v629_v3 }
  0x32   : > { %564 = vmatpush3.bf16.msra.mxu0 %v603_v20 }
  0x33   : > { %565 = vmatprep.subr.bf16.mxu0 %v629_v3 }
  0x36   : > { %566 = vmatpush3.bf16.msra.mxu0 %v604_v23 }
  0x39   : > { %568 = vmatmul.mubr.bf16.vlgmr.msra.gmra.mrb[0].mxu0 %v308_v24 }
 0x10c   : > { %v407_v25 = vpop.f32.mrb[0].mxu0 }
 0x10d   : > { %414 = vst [vmem:[%s289_s12] sm:$0xff] %v407_v25  ;;  %v569_v26 = vpop.f32.mrb[1].mxu0 }
 0x10e   : > { %v410_v27 = vpop.f32.mrb[2].mxu0 }
 0x10f   : > { %415 = vst [vmem:[%s289_s12 + $0x8] sm:$0xff] %v410_v27  ;;  %v570_v28 = vpop.f32.mrb[3].mxu0 }
 0x110 PF: > { %p11_p9 = scmp.ge.s32.totalorder %s673_s19, 4   ;;  %s747_s15 = smov %s623_s16 }
 0x111   : > { %s748_s16 = smov %s682_s22  ;;  %s749_s17 = smov %s673_s19 }
 0x112   :  { %13 = sbr.rel (!%p11_p9) target bundleno = 2 (0x2), region = 118 }

// kernel: qagnn_forward.20
= control target key start
LH: loop header
LB: loop body
LE: loop exit
PB: predicated region body
PF: predicated region fallthrough
CT: control target
= control target key end

     0   :  { %s660_s15 = smov 0   ;;  %s662_s16 = smov 0   ;;  %s746_s0 = inlined_call_operand.vmem [shape: bf16[32,128], index: 0, kind: input, shape index: {}]   ;;  %s747_s1 = inlined_call_operand.vmem [shape: bf16[32,256], index: 1, kind: input, shape index: {}]   ;;  %s748_s2 = inlined_call_operand.vmem [shape: bf16[32,128], index: 2, kind: input, shape index: {}]   ;;  %s749_s3 = inlined_call_operand.vmem [shape: bf16[128,128], index: 3, kind: input, shape index: {}]   ;;  %s750_s4 = inlined_call_operand.vmem [shape: f32[32,128], index: 4, kind: output, shape index: {}]  }
   0x1   :  { %s664_s17 = smov 0  }
   0x2 LB: > { %s508_s18 = sadd.s32 4294967295, %s631_s17   ;;  %s677_s19 = sadd.s32 1, %s631_s17   ;;  %s631_s17 = sphi %s664_s17, %s753_s17   ;;  %s627_s16 = sphi %s662_s16, %s752_s16   ;;  %s623_s15 = sphi %s660_s15, %s751_s15  }
   0x3   : > { %s44_s20 = ssub.s32 %s631_s17, %s677_s19  ;;  %s47_s21 = sadd.s32 1, %s627_s16 }
   0x4   : > { %p45_p0 = scmp.eq.s32.totalorder %s44_s20, 0  ;;  %p54_p1 = scmp.ne.s32.totalorder %s627_s16, %s623_s15 }
   0x5   : > { %p55_p2 = scmp.eq.s32.totalorder %s631_s17, 0  ;;  %p511_p4 = scmp.ge.s32.totalorder %s631_s17, 2 }
   0x6   : > { %s686_s22 = scalar_select %p45_p0, %s627_s16, %s47_s21  }
   0x7   : > { %p56_p3 = por %p55_p2, %p54_p1  ;;  %156 = sbr.rel (%p511_p4) target bundleno = 21 (0x15), region = 20 }
   0xe   : > { %168 = sbr.rel (!%p56_p3) target bundleno = 21 (0x15), region = 28  ;;  %s170_s23 = sand.u32 (%p56_p3), 1, %s627_s16  }
   0xf   : > { %s536_s24 = sshll.u32 (%p56_p3), %s631_s17, 4  ;;  %s512_s25 = sshll.u32 (%p56_p3), %s170_s23, 3 }
  0x10   : > { %s448_s28 = scalar_lea.vmem (%p56_p3), %s747_s1, %s536_s24  ;;  %s172_s29 = scalar_lea.vmem (%p56_p3), [#allocation2], %s512_s25 }
  0x11   : > { %v515_v0 = vld [vmem:[%s448_s28 + $0x4] sm:$0xf] (%p56_p3)  ;;  %v516_v1 = vld [vmem:[%s448_s28 + $0xc] sm:$0xf] (%p56_p3) }
  0x12   : > { %194 = vst [vmem:[%s172_s29] sm:$0xf] (%p56_p3), %v515_v0  ;;  %196 = vst [vmem:[%s172_s29 + $0x4] sm:$0xf] (%p56_p3), %v516_v1 }
  0x15 PF: > { %p517_p5 = scmp.ge.s32.totalorder %s631_s17, 1  ;;  %p231_p6 = scmp.lt.s32.totalorder %s631_s17, 3 }
  0x17   : > { %p232_p7 = pnand %p517_p5, %p231_p6 }
  0x18   : > { %v600_v2 = vld [vmem:[%s749_s3] sm:$0xff] (!%p232_p7)   ;;  %v633_v3 = vmov (!%p232_p7), 0.0   ;;  %v601_v4 = vld [vmem:[%s749_s3 + $0x8] sm:$0xff] (!%p232_p7)   ;;  %vm634_vm0 = vmmov (!%p232_p7), 0   ;;  %s519_s8 = sshll.u32 (!%p232_p7), %s508_s18, 1  ;;  %v602_v5 = vld [vmem:[%s749_s3 + $0x10] sm:$0xff] (!%p232_p7)  }
  0x19   : > { %235 = sbr.rel (%p232_p7) target bundleno = 274 (0x112), region = 73  ;;  %554 = vmatprep.subr.bf16.mxu0 (!%p232_p7), %v633_v3  ;;  %570 = vmatprep.mubr.msk.bf16.mxu0 (!%p232_p7), %vm634_vm0, %v633_v3  ;;  %p274_p8 = scmp.lt.s32.totalorder (!%p232_p7), %s519_s8, 3  ;;  %v603_v6 = vld [vmem:[%s749_s3 + $0x18] sm:$0xff] (!%p232_p7)   ;;  %v604_v7 = vld [vmem:[%s749_s3 + $0x20] sm:$0xff] (!%p232_p7)   ;;  %v605_v8 = vld [vmem:[%s749_s3 + $0x28] sm:$0xff] (!%p232_p7)  }
  0x1a   : > { %555 = vmatpush3.bf16.msra.mxu0 (!%p232_p7), %v600_v2  ;;  %v606_v9 = vld [vmem:[%s749_s3 + $0x30] sm:$0xff] (!%p232_p7)   ;;  %v607_v10 = vld [vmem:[%s749_s3 + $0x38] sm:$0xff] (!%p232_p7)   ;;  %s238_s29 = sand.u32 (!%p232_p7), 1, %s623_s15  }
  0x1b   : > { %556 = vmatprep.subr.bf16.mxu0 (!%p232_p7), %v633_v3  ;;  %s518_s30 = sshll.u32 (!%p232_p7), %s238_s29, 3 }
  0x1c   : > { %s240_s9 = scalar_lea.vmem (!%p232_p7), [#allocation2], %s518_s30 }
  0x1d   : > { %v542_v13 = vld [vmem:[%s240_s9] sm:$0xff] (!%p232_p7)  }
  0x1e   : > { %557 = vmatpush3.bf16.msra.mxu0 (!%p232_p7), %v601_v4  ;;  %v543_v15 = vunpack.c.l.bf16 (!%p232_p7), %v542_v13  ;;  %v544_v17 = vunpack.c.h.bf16 (!%p232_p7), %v542_v13 }
  0x1f   : > { %558 = vmatprep.subr.bf16.mxu0 (!%p232_p7), %v633_v3 }
  0x20   : > { %s755_s8 = smov (!%p274_p8, %s519_s8), 3 }
  0x21   : > { %s520_s11 = sshll.u32 %s755_s8, 2  ;;  %s524_s10 = sshll.u32 %s755_s8, 3 }
  0x22   : > { %s284_s14 = scalar_lea.vmem %s748_s2, %s520_s11  ;;  %559 = vmatpush3.bf16.msra.mxu0 %v602_v5  ;;  %s277_s7 = scalar_lea.vmem %s746_s0, %s520_s11 }
  0x23   : > { %560 = vmatprep.subr.bf16.mxu0 %v633_v3  ;;  %v608_v11 = vld [vmem:[%s284_s14] sm:$0xff]   ;;  %s290_s14 = scalar_lea.vmem %s750_s4, %s524_s10 }
  0x24   : > { %v538_v12 = vld [vmem:[%s277_s7] sm:$0xff]  }
  0x25   : > { %v539_v14 = vunpack.c.l.bf16 %v538_v12  ;;  %v540_v16 = vunpack.c.h.bf16 %v538_v12 }
  0x26   : > { %561 = vmatpush3.bf16.msra.mxu0 %v603_v6 }
  0x27   : > { %562 = vmatprep.subr.bf16.mxu0 %v633_v3  ;;  %v301_v18 = vadd.f32 %v543_v15, %v539_v14  ;;  %v302_v19 = vadd.f32 %v544_v17, %v540_v16 }
  0x2a   : > { %563 = vmatpush3.bf16.msra.mxu0 %v604_v7 }
  0x2b   : > { %564 = vmatprep.subr.bf16.mxu0 %v633_v3 }
  0x2e   : > { %565 = vmatpush3.bf16.msra.mxu0 %v605_v8 }
  0x2f   : > { %566 = vmatprep.subr.bf16.mxu0 %v633_v3 }
  0x32   : > { %567 = vmatpush3.bf16.msra.mxu0 %v606_v9 }
  0x33   : > { %568 = vmatprep.subr.bf16.mxu0 %v633_v3 }
  0x36   : > { %569 = vmatpush3.bf16.msra.mxu0 %v607_v10 }
  0x39   : > { %571 = vmatmul.mubr.bf16.vlgmr.msra.gmra.mrb[0].mxu0 %v608_v11 }
 0x10c   : > { %v409_v20 = vpop.f32.mrb[0].mxu0 }
 0x10d   : > { %v416_v21 = vmul.f32 %v409_v20, %v301_v18  ;;  %v572_v22 = vpop.f32.mrb[1].mxu0 }
 0x10e   : > { %v412_v23 = vpop.f32.mrb[2].mxu0 }
 0x10f   : > { %418 = vst [vmem:[%s290_s14] sm:$0xff] %v416_v21  ;;  %v417_v24 = vmul.f32 %v412_v23, %v302_v19  ;;  %v573_v25 = vpop.f32.mrb[3].mxu0 }
 0x111   : > { %419 = vst [vmem:[%s290_s14 + $0x8] sm:$0xff] %v417_v24 }
 0x112 PF: > { %p11_p9 = scmp.ge.s32.totalorder %s677_s19, 4   ;;  %s751_s15 = smov %s627_s16 }
 0x113   : > { %s752_s16 = smov %s686_s22  ;;  %s753_s17 = smov %s677_s19 }
 0x114   :  { %13 = sbr.rel (!%p11_p9) target bundleno = 2 (0x2), region = 118 }

// kernel: qagnn_forward.21
= control target key start
LH: loop header
LB: loop body
LE: loop exit
PB: predicated region body
PF: predicated region fallthrough
CT: control target
= control target key end

     0   :  { %v423_v0 = vmov 0.0   ;;  %vm424_vm0 = vmmov 0   ;;  %s531_s1 = inlined_call_operand.vmem [shape: bf16[128,128], index: 1, kind: input, shape index: {}]   ;;  %s532_s5 = inlined_call_operand.vmem [shape: bf16[128,128], index: 5, kind: input, shape index: {}]   ;;  %s533_s0 = inlined_call_operand.vmem [shape: bf16[16,128], index: 0, kind: input, shape index: {}]   ;;  %s534_s2 = inlined_call_operand.vmem [shape: f32[1,128], index: 2, kind: input, shape index: {}]   ;;  %s535_s3 = inlined_call_operand.vmem [shape: f32[1,128], index: 3, kind: input, shape index: {}]   ;;  %s536_s4 = inlined_call_operand.vmem [shape: f32[1,128], index: 4, kind: input, shape index: {}]   ;;  %s537_s6 = inlined_call_operand.vmem [shape: f32[1,128], index: 6, kind: input, shape index: {}]   ;;  %s538_s7 = inlined_call_operand.vmem [shape: bf16[16,128], index: 7, kind: output, shape index: {}]  }
   0x1   :  { %360 = vmatprep.subr.bf16.mxu0 %v423_v0  ;;  %v402_v1 = vld [vmem:[%s531_s1] sm:$0xff]   ;;  %376 = vmatprep.mubr.msk.bf16.mxu0 %vm424_vm0, %v423_v0  ;;  %v403_v2 = vld [vmem:[%s531_s1 + $0x8] sm:$0xff]   ;;  %v404_v3 = vld [vmem:[%s531_s1 + $0x10] sm:$0xff]  }
   0x2   :  { %380 = vmatprep.subr.bf16.mxu1 %v423_v0  ;;  %396 = vmatprep.mubr.msk.bf16.mxu1 %vm424_vm0, %v423_v0  ;;  %v411_v4 = vld [vmem:[%s532_s5] sm:$0xff]   ;;  %v405_v5 = vld [vmem:[%s531_s1 + $0x18] sm:$0xff]   ;;  %v412_v6 = vld [vmem:[%s532_s5 + $0x8] sm:$0xff]  }
   0x3   :  { %361 = vmatpush3.bf16.msra.mxu0 %v402_v1  ;;  %381 = vmatpush3.bf16.msra.mxu1 %v411_v4  ;;  %v406_v7 = vld [vmem:[%s531_s1 + $0x20] sm:$0xff]   ;;  %v413_v8 = vld [vmem:[%s532_s5 + $0x10] sm:$0xff]   ;;  %v407_v9 = vld [vmem:[%s531_s1 + $0x28] sm:$0xff]  }
   0x4   :  { %362 = vmatprep.subr.bf16.mxu0 %v423_v0  ;;  %382 = vmatprep.subr.bf16.mxu1 %v423_v0  ;;  %v414_v10 = vld [vmem:[%s532_s5 + $0x18] sm:$0xff]   ;;  %v408_v11 = vld [vmem:[%s531_s1 + $0x30] sm:$0xff]   ;;  %v415_v12 = vld [vmem:[%s532_s5 + $0x20] sm:$0xff]  }
   0x5   :  { %v409_v13 = vld [vmem:[%s531_s1 + $0x38] sm:$0xff]   ;;  %v410_v14 = vld [vmem:[%s533_s0] sm:$0xff]   ;;  %v416_v15 = vld [vmem:[%s532_s5 + $0x28] sm:$0xff]  }
   0x6   :  { %v417_v16 = vld [vmem:[%s532_s5 + $0x30] sm:$0xff]   ;;  %v418_v17 = vld [vmem:[%s532_s5 + $0x38] sm:$0xff]   ;;  %v312_v18 = vld [vmem:[%s534_s2] ss:$0 sm:$0xff] }
   0x7   :  { %363 = vmatpush3.bf16.msra.mxu0 %v403_v2  ;;  %383 = vmatpush3.bf16.msra.mxu1 %v412_v6  ;;  %v322_v20 = vld [vmem:[%s535_s3] ss:$0 sm:$0xff] }
   0x8   :  { %364 = vmatprep.subr.bf16.mxu0 %v423_v0  ;;  %384 = vmatprep.subr.bf16.mxu1 %v423_v0  ;;  %v323_v23 = vld [vmem:[%s536_s4] ss:$0 sm:$0xff] }
   0x9   :  { %v324_v34 = vld [vmem:[%s537_s6] ss:$0 sm:$0xff] }
   0xb   :  { %365 = vmatpush3.bf16.msra.mxu0 %v404_v3  ;;  %385 = vmatpush3.bf16.msra.mxu1 %v413_v8 }
   0xc   :  { %366 = vmatprep.subr.bf16.mxu0 %v423_v0  ;;  %386 = vmatprep.subr.bf16.mxu1 %v423_v0 }
   0xf   :  { %367 = vmatpush3.bf16.msra.mxu0 %v405_v5  ;;  %387 = vmatpush3.bf16.msra.mxu1 %v414_v10 }
  0x10   :  { %368 = vmatprep.subr.bf16.mxu0 %v423_v0  ;;  %388 = vmatprep.subr.bf16.mxu1 %v423_v0 }
  0x13   :  { %369 = vmatpush3.bf16.msra.mxu0 %v406_v7  ;;  %389 = vmatpush3.bf16.msra.mxu1 %v415_v12 }
  0x14   :  { %370 = vmatprep.subr.bf16.mxu0 %v423_v0  ;;  %390 = vmatprep.subr.bf16.mxu1 %v423_v0 }
  0x17   :  { %371 = vmatpush3.bf16.msra.mxu0 %v407_v9  ;;  %391 = vmatpush3.bf16.msra.mxu1 %v416_v15 }
  0x18   :  { %372 = vmatprep.subr.bf16.mxu0 %v423_v0  ;;  %392 = vmatprep.subr.bf16.mxu1 %v423_v0 }
  0x1b   :  { %373 = vmatpush3.bf16.msra.mxu0 %v408_v11  ;;  %393 = vmatpush3.bf16.msra.mxu1 %v417_v16 }
  0x1c   :  { %374 = vmatprep.subr.bf16.mxu0 %v423_v0  ;;  %394 = vmatprep.subr.bf16.mxu1 %v423_v0 }
  0x1f   :  { %375 = vmatpush3.bf16.msra.mxu0 %v409_v13  ;;  %395 = vmatpush3.bf16.msra.mxu1 %v418_v17 }
  0x22   :  { %377 = vmatmul.mubr.bf16.vlgmr.msra.gmra.mrb[0].mxu0 %v410_v14 }
  0xf5   :  { %v140_v19 = vpop.f32.mrb[0].mxu0 }
  0xf6   :  { %v141_v21 = vadd.f32 %v312_v18, %v140_v19  ;;  %v378_v22 = vpop.f32.mrb[1].mxu0 }
  0xf7   :  { %v143_v24 = vpop.f32.mrb[2].mxu0 }
  0xf8   :  { %v154_v25 = vmul.f32 %v322_v20, %v141_v21  ;;  %v144_v26 = vadd.f32 %v312_v18, %v143_v24  ;;  %v379_v27 = vpop.f32.mrb[3].mxu0 }
  0xfa   :  { %v163_v28 = vadd.f32 %v323_v23, %v154_v25  ;;  %v155_v29 = vmul.f32 %v322_v20, %v144_v26 }
  0xfc   :  { %v164_v30 = vadd.f32 %v323_v23, %v155_v29  ;;  %v165_v31 = vmax.f32 %v163_v28, 0.0 }
  0xfe   :  { %v166_v32 = vmax.f32 %v164_v30, 0.0 }
 0x100   :  { %v167_v33 = vpack.c.bf16 %v166_v32, %v165_v31 }
 0x102   :  { %397 = vmatmul.mubr.bf16.vlgmr.msra.gmra.mrb[0].mxu1 %v167_v33 }
 0x1d5   :  { %v273_v35 = vpop.f32.mrb[0].mxu1 }
 0x1d6   :  { %v274_v36 = vadd.f32 %v324_v34, %v273_v35  ;;  %v398_v37 = vpop.f32.mrb[1].mxu1 }
 0x1d7   :  { %v276_v38 = vpop.f32.mrb[2].mxu1 }
 0x1d8   :  { %v282_v39 = vmul.f32 0.044715, %v274_v36  ;;  %v277_v40 = vadd.f32 %v324_v34, %v276_v38  ;;  %v399_v41 = vpop.f32.mrb[3].mxu1  ;;  %v280_v54 = vmul.f32 0.5, %v274_v36 }
 0x1da   :  { %v284_v42 = vmul.f32 %v282_v39, %v274_v36  ;;  %v283_v43 = vmul.f32 0.044715, %v277_v40  ;;  %v281_v55 = vmul.f32 0.5, %v277_v40 }
 0x1dc   :  { %v286_v44 = vmul.f32 %v284_v42, %v274_v36  ;;  %v285_v45 = vmul.f32 %v283_v43, %v277_v40 }
 0x1de   :  { %v288_v46 = vadd.f32 %v286_v44, %v274_v36  ;;  %v287_v47 = vmul.f32 %v285_v45, %v277_v40 }
 0x1e0   :  { %v290_v48 = vmul.f32 0.7978846, %v288_v46  ;;  %v289_v49 = vadd.f32 %v287_v47, %v277_v40 }
 0x1e2   :  { %419 = vtanh.f32 %v290_v48  ;;  %v291_v50 = vmul.f32 0.7978846, %v289_v49 }
 0x1e4   :  { %421 = vtanh.f32 %v291_v50 }
 0x1ec   :  { %v420_v51 = vpop.eup %419 }
 0x1ed   :  { %v294_v52 = vadd.f32 1.0, %v420_v51 }
 0x1ee   :  { %v422_v53 = vpop.eup %421 }
 0x1ef   :  { %v295_v56 = vadd.f32 1.0, %v422_v53  ;;  %v296_v57 = vmul.f32 %v294_v52, %v280_v54 }
 0x1f1   :  { %v297_v58 = vmul.f32 %v295_v56, %v281_v55 }
 0x1f3   :  { %v340_v59 = vpack.c.bf16 %v297_v58, %v296_v57 }
 0x1f5   :  { %341 = vst [vmem:[%s538_s7] sm:$0xff] %v340_v59  }

// kernel: qagnn_forward.27
= control target key start
LH: loop header
LB: loop body
LE: loop exit
PB: predicated region body
PF: predicated region fallthrough
CT: control target
= control target key end

     0   :  { %v381_v0 = vmov 0.0   ;;  %vm382_vm0 = vmmov 0   ;;  %s476_s3 = inlined_call_operand.vmem [shape: bf16[128,128], index: 3, kind: input, shape index: {}]   ;;  %s477_s2 = inlined_call_operand.vmem [shape: bf16[128,128], index: 2, kind: input, shape index: {}]   ;;  %s478_s1 = inlined_call_operand.vmem [shape: bf16[16,128], index: 1, kind: input, shape index: {}]   ;;  %s479_s0 = inlined_call_operand.vmem [shape: bf16[16,128], index: 0, kind: input, shape index: {}]   ;;  %s480_s4 = inlined_call_operand.vmem [shape: f32[1,128], index: 4, kind: input, shape index: {}]   ;;  %s481_s5 = inlined_call_operand.vmem [shape: f32[16,128], index: 5, kind: output, shape index: {}]  }
   0x1   :  { %317 = vmatprep.subr.bf16.mxu0 %v381_v0  ;;  %337 = vmatprep.subr.bf16.mxu1 %v381_v0  ;;  %v359_v1 = vld [vmem:[%s476_s3] sm:$0xff]   ;;  %v361_v3 = vld [vmem:[%s476_s3 + $0x8] sm:$0xff]   ;;  %v363_v5 = vld [vmem:[%s476_s3 + $0x10] sm:$0xff]  }
   0x2   :  { %v360_v2 = vld [vmem:[%s477_s2] sm:$0xff]   ;;  %333 = vmatprep.mubr.msk.bf16.mxu0 %vm382_vm0, %v381_v0  ;;  %353 = vmatprep.mubr.msk.bf16.mxu1 %vm382_vm0, %v381_v0  ;;  %v362_v4 = vld [vmem:[%s477_s2 + $0x8] sm:$0xff]   ;;  %v364_v6 = vld [vmem:[%s477_s2 + $0x10] sm:$0xff]  }
   0x3   :  { %318 = vmatpush3.bf16.msra.mxu0 %v359_v1  ;;  %338 = vmatpush3.bf16.msra.mxu1 %v360_v2  ;;  %v365_v7 = vld [vmem:[%s476_s3 + $0x18] sm:$0xff]   ;;  %v367_v9 = vld [vmem:[%s476_s3 + $0x20] sm:$0xff]   ;;  %v369_v11 = vld [vmem:[%s476_s3 + $0x28] sm:$0xff]  }
   0x4   :  { %319 = vmatprep.subr.bf16.mxu0 %v381_v0  ;;  %339 = vmatprep.subr.bf16.mxu1 %v381_v0  ;;  %v366_v8 = vld [vmem:[%s477_s2 + $0x18] sm:$0xff]   ;;  %v368_v10 = vld [vmem:[%s477_s2 + $0x20] sm:$0xff]   ;;  %v370_v12 = vld [vmem:[%s477_s2 + $0x28] sm:$0xff]  }
   0x5   :  { %v371_v13 = vld [vmem:[%s476_s3 + $0x30] sm:$0xff]   ;;  %v373_v15 = vld [vmem:[%s476_s3 + $0x38] sm:$0xff]   ;;  %v375_v17 = vld [vmem:[%s478_s1] sm:$0xff]  }
   0x6   :  { %v372_v14 = vld [vmem:[%s477_s2 + $0x30] sm:$0xff]   ;;  %v374_v16 = vld [vmem:[%s477_s2 + $0x38] sm:$0xff]   ;;  %v376_v18 = vld [vmem:[%s479_s0] sm:$0xff]  }
   0x7   :  { %320 = vmatpush3.bf16.msra.mxu0 %v361_v3  ;;  %340 = vmatpush3.bf16.msra.mxu1 %v362_v4  ;;  %v298_v21 = vld [vmem:[%s480_s4] ss:$0 sm:$0xff] }
   0x8   :  { %321 = vmatprep.subr.bf16.mxu0 %v381_v0  ;;  %341 = vmatprep.subr.bf16.mxu1 %v381_v0 }
   0xb   :  { %322 = vmatpush3.bf16.msra.mxu0 %v363_v5  ;;  %342 = vmatpush3.bf16.msra.mxu1 %v364_v6 }
   0xc   :  { %323 = vmatprep.subr.bf16.mxu0 %v381_v0  ;;  %343 = vmatprep.subr.bf16.mxu1 %v381_v0 }
   0xf   :  { %324 = vmatpush3.bf16.msra.mxu0 %v365_v7  ;;  %344 = vmatpush3.bf16.msra.mxu1 %v366_v8 }
  0x10   :  { %325 = vmatprep.subr.bf16.mxu0 %v381_v0  ;;  %345 = vmatprep.subr.bf16.mxu1 %v381_v0 }
  0x13   :  { %326 = vmatpush3.bf16.msra.mxu0 %v367_v9  ;;  %346 = vmatpush3.bf16.msra.mxu1 %v368_v10 }
  0x14   :  { %327 = vmatprep.subr.bf16.mxu0 %v381_v0  ;;  %347 = vmatprep.subr.bf16.mxu1 %v381_v0 }
  0x17   :  { %328 = vmatpush3.bf16.msra.mxu0 %v369_v11  ;;  %348 = vmatpush3.bf16.msra.mxu1 %v370_v12 }
  0x18   :  { %329 = vmatprep.subr.bf16.mxu0 %v381_v0  ;;  %349 = vmatprep.subr.bf16.mxu1 %v381_v0 }
  0x1b   :  { %330 = vmatpush3.bf16.msra.mxu0 %v371_v13  ;;  %350 = vmatpush3.bf16.msra.mxu1 %v372_v14 }
  0x1c   :  { %331 = vmatprep.subr.bf16.mxu0 %v381_v0  ;;  %351 = vmatprep.subr.bf16.mxu1 %v381_v0 }
  0x1f   :  { %332 = vmatpush3.bf16.msra.mxu0 %v373_v15  ;;  %352 = vmatpush3.bf16.msra.mxu1 %v374_v16 }
  0x22   :  { %334 = vmatmul.mubr.bf16.vlgmr.msra.gmra.mrb[0].mxu0 %v375_v17  ;;  %354 = vmatmul.mubr.bf16.vlgmr.msra.gmra.mrb[0].mxu1 %v376_v18 }
  0xf5   :  { %v145_v19 = vpop.f32.mrb[0].mxu0  ;;  %v240_v20 = vpop.f32.mrb[0].mxu1 }
  0xf6   :  { %v335_v22 = vpop.f32.mrb[1].mxu0  ;;  %v241_v23 = vadd.f32 %v240_v20, %v145_v19  ;;  %v355_v24 = vpop.f32.mrb[1].mxu1 }
  0xf7   :  { %v148_v25 = vpop.f32.mrb[2].mxu0  ;;  %v243_v26 = vpop.f32.mrb[2].mxu1 }
  0xf8   :  { %v336_v27 = vpop.f32.mrb[3].mxu0  ;;  %v254_v28 = vadd.f32 %v298_v21, %v241_v23  ;;  %v244_v29 = vadd.f32 %v243_v26, %v148_v25  ;;  %v356_v30 = vpop.f32.mrb[3].mxu1 }
  0xfa   :  { %v258_v31 = vmul.f32 0.044715, %v254_v28  ;;  %v255_v32 = vadd.f32 %v298_v21, %v244_v29  ;;  %v256_v43 = vmul.f32 0.5, %v254_v28 }
  0xfc   :  { %v260_v33 = vmul.f32 %v258_v31, %v254_v28  ;;  %v259_v34 = vmul.f32 0.044715, %v255_v32  ;;  %v257_v47 = vmul.f32 0.5, %v255_v32 }
  0xfe   :  { %v262_v35 = vmul.f32 %v260_v33, %v254_v28  ;;  %v261_v36 = vmul.f32 %v259_v34, %v255_v32 }
 0x100   :  { %v264_v37 = vadd.f32 %v262_v35, %v254_v28  ;;  %v263_v38 = vmul.f32 %v261_v36, %v255_v32 }
 0x102   :  { %v266_v39 = vmul.f32 0.7978846, %v264_v37  ;;  %v265_v40 = vadd.f32 %v263_v38, %v255_v32 }
 0x104   :  { %377 = vtanh.f32 %v266_v39  ;;  %v267_v41 = vmul.f32 0.7978846, %v265_v40 }
 0x106   :  { %379 = vtanh.f32 %v267_v41 }
 0x10e   :  { %v378_v42 = vpop.eup %377 }
 0x10f   :  { %v270_v44 = vadd.f32 1.0, %v378_v42 }
 0x110   :  { %v380_v45 = vpop.eup %379 }
 0x111   :  { %v272_v46 = vmul.f32 %v270_v44, %v256_v43  ;;  %v271_v48 = vadd.f32 1.0, %v380_v45 }
 0x113   :  { %274 = vst [vmem:[%s481_s5] sm:$0xff] %v272_v46  ;;  %v273_v49 = vmul.f32 %v271_v48, %v257_v47 }
 0x115   :  { %275 = vst [vmem:[%s481_s5 + $0x8] sm:$0xff] %v273_v49 }

</bundles_post_ra>
